<compile_context>
chip_gen: v6e
topology: v6e:2x2x1
jax: 0.10.0
libtpu: 0.0.40
codegen_flags: <defaults>
</compile_context>

<pallas_src>
import functools

import jax
import jax.numpy as jnp
from jax.experimental import pallas as pl
from jax.experimental.pallas import tpu as pltpu


# -----------------------------------------------------------------------------
# Kernel 1: gate logits + softmax (scores over experts), tiled over tokens.
# -----------------------------------------------------------------------------
def gate_kernel(x_ref, wgt_ref, s_ref):
    # x_ref: (tg, D) f32, wgt_ref: (D, E) f32, s_ref: (tg, E) f32
    logits = jnp.dot(x_ref[...], wgt_ref[...], preferred_element_type=jnp.float32)
    m = jnp.max(logits, axis=-1, keepdims=True)
    p = jnp.exp(logits - m)
    s_ref[...] = p / jnp.sum(p, axis=-1, keepdims=True)


def gate_scores(x, gate_w, *, tg):
    T, D = x.shape
    E = gate_w.shape[0]
    assert T % tg == 0 and tg % 8 == 0
    wgt = gate_w.T  # (D, E): avoid an in-kernel transpose

    return pl.pallas_call(
        gate_kernel,
        out_shape=jax.ShapeDtypeStruct((T, E), jnp.float32),
        grid_spec=pltpu.PrefetchScalarGridSpec(
            num_scalar_prefetch=0,
            grid=(T // tg,),
            in_specs=[
                pl.BlockSpec((tg, D), lambda i: (i, 0)),
                pl.BlockSpec((D, E), lambda i: (0, 0)),
            ],
            out_specs=pl.BlockSpec((tg, E), lambda i: (i, 0)),
        ),
        compiler_params=pltpu.CompilerParams(dimension_semantics=("parallel",)),
    )(x, wgt)


# -----------------------------------------------------------------------------
# Kernel 2: routed expert FFNs.
# grid = (num_token_tiles, num_experts); expert axis is the reduction axis.
# All expert weights are VMEM-resident (constant block index -> one HBM fetch).
# A scalar-prefetched (n_tiles, E) mask skips experts with no routed tokens.
# -----------------------------------------------------------------------------
def moe_ffn_kernel(mask_ref, gate_ref, x_ref, w1_ref, w3_ref, w2_ref, o_ref):
    i = pl.program_id(0)   # token tile
    e = pl.program_id(1)   # expert (reduction axis)

    @pl.when(e == 0)
    def _():
        o_ref[...] = jnp.zeros_like(o_ref)

    @pl.when(mask_ref[i, e] > 0)
    def _():
        xb = x_ref[...].astype(jnp.bfloat16)                              # (tm, D)
        h = jnp.dot(xb, w1_ref[e], preferred_element_type=jnp.float32)    # (tm, H) f32
        g = jnp.dot(xb, w3_ref[e], preferred_element_type=jnp.float32)    # (tm, H) f32
        # silu(h) * g in f32; reciprocal goes to the EUP slot.
        sig = pl.reciprocal(1.0 + jnp.exp(-h), approx=True)
        act = (h * sig * g).astype(jnp.bfloat16)
        y = jnp.dot(act, w2_ref[e], preferred_element_type=jnp.float32)   # (tm, D) f32

        gate = gate_ref[...]                                              # (tm, E) f32
        sel = jax.lax.broadcasted_iota(jnp.int32, gate.shape, 1) == e
        w_tok = jnp.sum(jnp.where(sel, gate, 0.0), axis=-1, keepdims=True)  # (tm, 1)
        o_ref[...] += w_tok * y


def moe_ffn(x, gate_dense, tile_mask, w1, w3, w2, *, tm):
    T, D = x.shape
    E, _, H = w1.shape
    assert T % tm == 0 and tm % 8 == 0
    assert D % 128 == 0, "model dim must be a multiple of 128 (lane-dense output)"
    assert H % 128 == 0, "hidden dim must be a multiple of 128 (lane-dense MXU tiles)"

    n_tiles = T // tm

    # VMEM budget: double-buffered resident bf16 weights + activation tiles.
    w_bytes = 2 * (w1.size + w3.size + w2.size) * jnp.dtype(w1.dtype).itemsize
    act_bytes = (2 * tm * D * jnp.dtype(x.dtype).itemsize    # x tiles
                 + 2 * tm * E * 4                            # routing weights
                 + 2 * tm * D * 4)                           # f32 output/accumulator
    vmem_limit = int(min(max(w_bytes + act_bytes + (4 << 20), 16 << 20), 48 << 20))

    return pl.pallas_call(
        moe_ffn_kernel,
        out_shape=jax.ShapeDtypeStruct((T, D), jnp.float32),
        grid_spec=pltpu.PrefetchScalarGridSpec(
            num_scalar_prefetch=1,                           # tile_mask -> SMEM
            grid=(n_tiles, E),
            in_specs=[
                pl.BlockSpec((tm, E), lambda i, e, m: (i, 0)),       # routing weights
                pl.BlockSpec((tm, D), lambda i, e, m: (i, 0)),       # x tile
                pl.BlockSpec((E, D, H), lambda i, e, m: (0, 0, 0)),  # w1 (resident)
                pl.BlockSpec((E, D, H), lambda i, e, m: (0, 0, 0)),  # w3 (resident)
                pl.BlockSpec((E, H, D), lambda i, e, m: (0, 0, 0)),  # w2 (resident)
            ],
            out_specs=pl.BlockSpec((tm, D), lambda i, e, m: (i, 0)),
        ),
        compiler_params=pltpu.CompilerParams(
            dimension_semantics=("parallel", "arbitrary"),
            vmem_limit_bytes=vmem_limit),
    )(tile_mask, gate_dense, x, w1, w3, w2)


# -----------------------------------------------------------------------------
# Full MOEFeedForward forward (inference path).
# -----------------------------------------------------------------------------
def moe_feedforward(x, params, *, top_k, tm=256):
    """x: [bsz, seq, dim] -> [bsz, seq, dim]"""
    bsz, seq, dim = x.shape
    T = bsz * seq
    x2d = x.reshape(T, dim)
    E = params["gate_w"].shape[0]

    scores = gate_scores(x2d, params["gate_w"], tg=tm)           # [T, E] f32
    topk_w, topk_idx = jax.lax.top_k(scores, top_k)              # [T, K]

    # TODO(synk): top-k + scatter-to-dense is data-dependent selection; kept in
    # JAX glue. For large E, group tokens by expert (megablox-style) with
    # scalar-prefetched group offsets instead of a dense routing matrix.
    dense = jnp.zeros((T, E), jnp.float32).at[
        jnp.arange(T)[:, None], topk_idx].add(topk_w)

    n_tiles = T // tm
    tile_mask = (dense.reshape(n_tiles, tm, E) != 0).any(axis=1).astype(jnp.int32)

    y = moe_ffn(x2d, dense, tile_mask,
                params["w1"], params["w3"], params["w2"], tm=tm)
    # TODO(synk): the module's forward adds shared_expert_output, but __init__
    # defines no shared expert module, so it is treated as zero here.
    return y.astype(x.dtype).reshape(bsz, seq, dim)


# -----------------------------------------------------------------------------
# Pure-JAX reference (same bf16 matmul / f32 accumulation recipe).
# -----------------------------------------------------------------------------
def reference(x, params, *, top_k):
    bsz, seq, dim = x.shape
    x2d = x.reshape(-1, dim)
    logits = x2d @ params["gate_w"].T
    scores = jax.nn.softmax(logits, axis=-1)
    tw, ti = jax.lax.top_k(scores, top_k)
    E = params["gate_w"].shape[0]
    out = jnp.zeros_like(x2d)
    xb = x2d.astype(jnp.bfloat16)
    for e in range(E):
        h = jnp.dot(xb, params["w1"][e], preferred_element_type=jnp.float32)
        g = jnp.dot(xb, params["w3"][e], preferred_element_type=jnp.float32)
        act = (jax.nn.sigmoid(h) * h * g).astype(jnp.bfloat16)
        ye = jnp.dot(act, params["w2"][e], preferred_element_type=jnp.float32)
        we = jnp.sum(jnp.where(ti == e, tw, 0.0), axis=-1, keepdims=True)
        out = out + we * ye
    return out.reshape(bsz, seq, dim)


def init_params(key, *, dim, hidden, n_experts):
    ks = jax.random.split(key, 4)

    def uinit(k, shape, fan_in):
        bound = 1.0 / jnp.sqrt(jnp.float32(fan_in))
        return jax.random.uniform(k, shape, jnp.float32, -bound, bound)

    return {
        # Routing weights stay f32 (top-k selection must not be perturbed).
        "gate_w": uinit(ks[0], (n_experts, dim), dim),                          # [E, D]
        # Expert weights in bf16 (MXU-native, halves HBM/VMEM traffic).
        "w1": uinit(ks[1], (n_experts, dim, hidden), dim).astype(jnp.bfloat16),   # [E, D, H]
        "w3": uinit(ks[2], (n_experts, dim, hidden), dim).astype(jnp.bfloat16),   # [E, D, H]
        "w2": uinit(ks[3], (n_experts, hidden, dim), hidden).astype(jnp.bfloat16),# [E, H, D]
    }


if __name__ == "__main__":
    # Small config consistent with the module's __init__ arithmetic, but with
    # lane-aligned dims (D, H multiples of 128) so the kernel is lane-dense.
    bsz, seq, dim = 2, 64, 128
    multiple_of = 64
    n_routed_experts = 4
    top_k = 2
    hidden = int(2 * (4 * dim) / 3)
    hidden = multiple_of * ((hidden + multiple_of - 1) // multiple_of)  # -> 384

    key = jax.random.PRNGKey(0)
    kx, kp = jax.random.split(key)
    x = jax.random.normal(kx, (bsz, seq, dim), jnp.float32)
    params = init_params(kp, dim=dim, hidden=hidden, n_experts=n_routed_experts)

    fwd = jax.jit(functools.partial(moe_feedforward, top_k=top_k, tm=64))
    y = fwd(x, params)
    jax.block_until_ready(y)

    y_ref = reference(x, params, top_k=top_k)
    assert y.shape == (bsz, seq, dim)
    assert jnp.allclose(y, y_ref, atol=2e-2, rtol=2e-2), "mismatch vs reference"

    print("KERNEL_OK")
</pallas_src>

<mosaic_0001>
module attributes {stable_mosaic.version = 11 : i64} {
  func.func private @main(%arg0: i32) attributes {dimension_semantics = [#tpu.dimension_semantics<core_parallel>], iteration_bounds = array<i64: 2>, tpu.core_type = #tpu.core_type<sc_scalar_subcore>, window_params = []} {
    return
  }
}

module attributes {stable_mosaic.version = 11 : i64} {
  func.func private @main(%arg0: i32) attributes {dimension_semantics = [#tpu.dimension_semantics<core_parallel>], iteration_bounds = array<i64: 2>, tpu.core_type = #tpu.core_type<sc_scalar_subcore>, window_params = []} {
    return
  }
}

module attributes {stable_mosaic.version = 11 : i64} {
  func.func @gate_kernel(%arg0: i32, %arg1: memref<64x128xf32, #tpu.memory_space<vmem>>, %arg2: memref<128x4xf32, #tpu.memory_space<vmem>>, %arg3: memref<64x4xf32, #tpu.memory_space<vmem>>) attributes {dimension_semantics = [#tpu.dimension_semantics<parallel>], iteration_bounds = array<i64: 2>, scalar_prefetch = 0 : i64, scratch_operands = 0 : i64, tpu.core_type = #tpu.core_type<tc>, window_params = [{transform_indices = @transform_0, window_bounds = array<i64: 64, 128>}, {pipeline_mode = #tpu.pipeline_mode<synchronous>, transform_indices = @transform_1, window_bounds = array<i64: 128, 4>}, {transform_indices = @transform_2, window_bounds = array<i64: 64, 4>}]} {
    %c0 = arith.constant 0 : index
    %c0_0 = arith.constant 0 : index
    %0 = vector.load %arg1[%c0, %c0_0] : memref<64x128xf32, #tpu.memory_space<vmem>>, vector<64x128xf32>
    %c0_1 = arith.constant 0 : index
    %c0_2 = arith.constant 0 : index
    %1 = vector.load %arg2[%c0_1, %c0_2] : memref<128x4xf32, #tpu.memory_space<vmem>>, vector<128x4xf32>
    %cst = arith.constant dense<0.000000e+00> : vector<64x4xf32>
    %2 = tpu.matmul %0, %1, %cst {dimension_numbers = #tpu.dot_dimension_numbers<[1], [0], [0], [1], [0, 0, 1, 1], [], []>} : vector<64x128xf32>, vector<128x4xf32>, vector<64x4xf32> -> vector<64x4xf32>
    %cst_3 = arith.constant dense<0xFF800000> : vector<64xf32>
    %3 = vector.multi_reduction <maximumf>, %2, %cst_3 [1] : vector<64x4xf32> to vector<64xf32>
    %4 = vector.shape_cast %3 : vector<64xf32> to vector<64x1xf32>
    %5 = vector.broadcast %4 : vector<64x1xf32> to vector<64x4xf32>
    %6 = arith.subf %2, %5 : vector<64x4xf32>
    %7 = math.exp %6 : vector<64x4xf32>
    %cst_4 = arith.constant dense<0.000000e+00> : vector<64xf32>
    %8 = vector.multi_reduction <add>, %7, %cst_4 [1] : vector<64x4xf32> to vector<64xf32>
    %9 = vector.shape_cast %8 : vector<64xf32> to vector<64x1xf32>
    %10 = vector.broadcast %9 : vector<64x1xf32> to vector<64x4xf32>
    %11 = arith.divf %7, %10 : vector<64x4xf32>
    %c0_5 = arith.constant 0 : index
    %c0_6 = arith.constant 0 : index
    %12 = vector.load %arg3[%c0_5, %c0_6] : memref<64x4xf32, #tpu.memory_space<vmem>>, vector<64x4xf32>
    tpu.vector_store %arg3[%c0_5, %c0_6], %11 {strides = array<i32>} : memref<64x4xf32, #tpu.memory_space<vmem>>, vector<64x4xf32>,
    return
  }
  func.func @transform_0(%arg0: i32) -> (i32, i32) {
    %c0_i32 = arith.constant 0 : i32
    %c0_i32_0 = arith.constant 0 : i32
    return %arg0, %c0_i32 : i32, i32
  }
  func.func @transform_1(%arg0: i32) -> (i32, i32) {
    %c0_i32 = arith.constant 0 : i32
    %c0_i32_0 = arith.constant 0 : i32
    %c0_i32_1 = arith.constant 0 : i32
    return %c0_i32, %c0_i32_0 : i32, i32
  }
  func.func @transform_2(%arg0: i32) -> (i32, i32) {
    %c0_i32 = arith.constant 0 : i32
    %c0_i32_0 = arith.constant 0 : i32
    return %arg0, %c0_i32 : i32, i32
  }
}

module attributes {stable_mosaic.version = 11 : i64} {
  func.func @moe_ffn_kernel(%arg0: i32, %arg1: i32, %arg2: memref<2x4xi32, #tpu.memory_space<smem>>, %arg3: memref<64x4xf32, #tpu.memory_space<vmem>>, %arg4: memref<64x128xf32, #tpu.memory_space<vmem>>, %arg5: memref<4x128x384xbf16, #tpu.memory_space<vmem>>, %arg6: memref<4x128x384xbf16, #tpu.memory_space<vmem>>, %arg7: memref<4x384x128xbf16, #tpu.memory_space<vmem>>, %arg8: memref<64x128xf32, #tpu.memory_space<vmem>>) attributes {dimension_semantics = [#tpu.dimension_semantics<parallel>, #tpu.dimension_semantics<arbitrary>], iteration_bounds = array<i64: 2, 4>, scalar_prefetch = 1 : i64, scratch_operands = 0 : i64, tpu.core_type = #tpu.core_type<tc>, window_params = [{transform_indices = @transform_0, window_bounds = array<i64: 64, 4>}, {transform_indices = @transform_1, window_bounds = array<i64: 64, 128>}, {pipeline_mode = #tpu.pipeline_mode<synchronous>, transform_indices = @transform_2, window_bounds = array<i64: 4, 128, 384>}, {pipeline_mode = #tpu.pipeline_mode<synchronous>, transform_indices = @transform_3, window_bounds = array<i64: 4, 128, 384>}, {pipeline_mode = #tpu.pipeline_mode<synchronous>, transform_indices = @transform_4, window_bounds = array<i64: 4, 384, 128>}, {transform_indices = @transform_5, window_bounds = array<i64: 64, 128>}]} {
    %c0_i32 = arith.constant 0 : i32
    %0 = arith.cmpi eq, %arg1, %c0_i32 : i32
    %1 = arith.extui %0 : i1 to i32
    %c0_i32_0 = arith.constant 0 : i32
    %2 = arith.cmpi ne, %1, %c0_i32_0 : i32
    scf.if %2 {
      %cst = arith.constant 0.000000e+00 : f32
      %9 = vector.broadcast %cst : f32 to vector<64x128xf32>
      %c0 = arith.constant 0 : index
      %c0_3 = arith.constant 0 : index
      %10 = vector.load %arg8[%c0, %c0_3] : memref<64x128xf32, #tpu.memory_space<vmem>>, vector<64x128xf32>
      tpu.vector_store %arg8[%c0, %c0_3], %9 {strides = array<i32>} : memref<64x128xf32, #tpu.memory_space<vmem>>, vector<64x128xf32>,
    } else {
    }
    %3 = arith.index_cast %arg0 : i32 to index
    %4 = arith.index_cast %arg1 : i32 to index
    %5 = memref.load %arg2[%3, %4] : memref<2x4xi32, #tpu.memory_space<smem>>
    %c0_i32_1 = arith.constant 0 : i32
    %6 = arith.cmpi sgt, %5, %c0_i32_1 : i32
    %7 = arith.extui %6 : i1 to i32
    %c0_i32_2 = arith.constant 0 : i32
    %8 = arith.cmpi ne, %7, %c0_i32_2 : i32
    scf.if %8 {
      %c0 = arith.constant 0 : index
      %c0_3 = arith.constant 0 : index
      %9 = vector.load %arg4[%c0, %c0_3] : memref<64x128xf32, #tpu.memory_space<vmem>>, vector<64x128xf32>
      %10 = arith.truncf %9 : vector<64x128xf32> to vector<64x128xbf16>
      %11 = arith.index_cast %arg1 : i32 to index
      %c0_4 = arith.constant 0 : index
      %c0_5 = arith.constant 0 : index
      %12 = vector.load %arg5[%11, %c0_4, %c0_5] : memref<4x128x384xbf16, #tpu.memory_space<vmem>>, vector<1x128x384xbf16>
      %13 = vector.shape_cast %12 : vector<1x128x384xbf16> to vector<128x384xbf16>
      %cst = arith.constant dense<0.000000e+00> : vector<64x384xf32>
      %14 = tpu.matmul %10, %13, %cst {dimension_numbers = #tpu.dot_dimension_numbers<[1], [0], [0], [1], [0, 0, 1, 1], [], []>} : vector<64x128xbf16>, vector<128x384xbf16>, vector<64x384xf32> -> vector<64x384xf32>
      %15 = arith.index_cast %arg1 : i32 to index
      %c0_6 = arith.constant 0 : index
      %c0_7 = arith.constant 0 : index
      %16 = vector.load %arg6[%15, %c0_6, %c0_7] : memref<4x128x384xbf16, #tpu.memory_space<vmem>>, vector<1x128x384xbf16>
      %17 = vector.shape_cast %16 : vector<1x128x384xbf16> to vector<128x384xbf16>
      %cst_8 = arith.constant dense<0.000000e+00> : vector<64x384xf32>
      %18 = tpu.matmul %10, %17, %cst_8 {dimension_numbers = #tpu.dot_dimension_numbers<[1], [0], [0], [1], [0, 0, 1, 1], [], []>} : vector<64x128xbf16>, vector<128x384xbf16>, vector<64x384xf32> -> vector<64x384xf32>
      %cst_9 = arith.constant 0.000000e+00 : f32
      %19 = vector.broadcast %cst_9 : f32 to vector<64x384xf32>
      %20 = arith.subf %19, %14 : vector<64x384xf32>
      %21 = math.exp %20 : vector<64x384xf32>
      %cst_10 = arith.constant 1.000000e+00 : f32
      %22 = vector.broadcast %cst_10 : f32 to vector<64x384xf32>
      %23 = arith.addf %22, %21 : vector<64x384xf32>
      %24 = tpu.reciprocal %23 {approx = true} : vector<64x384xf32> -> vector<64x384xf32>
      %25 = arith.mulf %14, %24 : vector<64x384xf32>
      %26 = arith.mulf %25, %18 : vector<64x384xf32>
      %27 = arith.truncf %26 : vector<64x384xf32> to vector<64x384xbf16>
      %28 = arith.index_cast %arg1 : i32 to index
      %c0_11 = arith.constant 0 : index
      %c0_12 = arith.constant 0 : index
      %29 = vector.load %arg7[%28, %c0_11, %c0_12] : memref<4x384x128xbf16, #tpu.memory_space<vmem>>, vector<1x384x128xbf16>
      %30 = vector.shape_cast %29 : vector<1x384x128xbf16> to vector<384x128xbf16>
      %cst_13 = arith.constant dense<0.000000e+00> : vector<64x128xf32>
      %31 = tpu.matmul %27, %30, %cst_13 {dimension_numbers = #tpu.dot_dimension_numbers<[1], [0], [0], [1], [0, 0, 1, 1], [], []>} : vector<64x384xbf16>, vector<384x128xbf16>, vector<64x128xf32> -> vector<64x128xf32>
      %c0_14 = arith.constant 0 : index
      %c0_15 = arith.constant 0 : index
      %32 = vector.load %arg3[%c0_14, %c0_15] : memref<64x4xf32, #tpu.memory_space<vmem>>, vector<64x4xf32>
      %33 = tpu.iota {dimensions = array<i32: 1>} : vector<64x4xi32>
      %34 = vector.broadcast %arg1 : i32 to vector<64x4xi32>
      %35 = arith.cmpi eq, %33, %34 : vector<64x4xi32>
      %cst_16 = arith.constant 0.000000e+00 : f32
      %36 = vector.broadcast %cst_16 : f32 to vector<64x4xf32>
      %37 = arith.select %35, %32, %36 : vector<64x4xi1>, vector<64x4xf32>
      %cst_17 = arith.constant dense<0.000000e+00> : vector<64xf32>
      %38 = vector.multi_reduction <add>, %37, %cst_17 [1] : vector<64x4xf32> to vector<64xf32>
      %39 = vector.shape_cast %38 : vector<64xf32> to vector<64x1xf32>
      %c0_18 = arith.constant 0 : index
      %c0_19 = arith.constant 0 : index
      %40 = vector.load %arg8[%c0_18, %c0_19] : memref<64x128xf32, #tpu.memory_space<vmem>>, vector<64x128xf32>
      %41 = vector.broadcast %39 : vector<64x1xf32> to vector<64x128xf32>
      %42 = arith.mulf %41, %31 : vector<64x128xf32>
      %43 = arith.addf %40, %42 : vector<64x128xf32>
      %c0_20 = arith.constant 0 : index
      %c0_21 = arith.constant 0 : index
      %44 = vector.load %arg8[%c0_20, %c0_21] : memref<64x128xf32, #tpu.memory_space<vmem>>, vector<64x128xf32>
      tpu.vector_store %arg8[%c0_20, %c0_21], %43 {strides = array<i32>} : memref<64x128xf32, #tpu.memory_space<vmem>>, vector<64x128xf32>,
    } else {
    }
    return
  }
  func.func @transform_0(%arg0: i32, %arg1: i32, %arg2: memref<2x4xi32, #tpu.memory_space<smem>>) -> (i32, i32) {
    %c0_i32 = arith.constant 0 : i32
    %c0_i32_0 = arith.constant 0 : i32
    return %arg0, %c0_i32 : i32, i32
  }
  func.func @transform_1(%arg0: i32, %arg1: i32, %arg2: memref<2x4xi32, #tpu.memory_space<smem>>) -> (i32, i32) {
    %c0_i32 = arith.constant 0 : i32
    %c0_i32_0 = arith.constant 0 : i32
    return %arg0, %c0_i32 : i32, i32
  }
  func.func @transform_2(%arg0: i32, %arg1: i32, %arg2: memref<2x4xi32, #tpu.memory_space<smem>>) -> (i32, i32, i32) {
    %c0_i32 = arith.constant 0 : i32
    %c0_i32_0 = arith.constant 0 : i32
    %c0_i32_1 = arith.constant 0 : i32
    %c0_i32_2 = arith.constant 0 : i32
    return %c0_i32, %c0_i32_0, %c0_i32_1 : i32, i32, i32
  }
  func.func @transform_3(%arg0: i32, %arg1: i32, %arg2: memref<2x4xi32, #tpu.memory_space<smem>>) -> (i32, i32, i32) {
    %c0_i32 = arith.constant 0 : i32
    %c0_i32_0 = arith.constant 0 : i32
    %c0_i32_1 = arith.constant 0 : i32
    %c0_i32_2 = arith.constant 0 : i32
    return %c0_i32, %c0_i32_0, %c0_i32_1 : i32, i32, i32
  }
  func.func @transform_4(%arg0: i32, %arg1: i32, %arg2: memref<2x4xi32, #tpu.memory_space<smem>>) -> (i32, i32, i32) {
    %c0_i32 = arith.constant 0 : i32
    %c0_i32_0 = arith.constant 0 : i32
    %c0_i32_1 = arith.constant 0 : i32
    %c0_i32_2 = arith.constant 0 : i32
    return %c0_i32, %c0_i32_0, %c0_i32_1 : i32, i32, i32
  }
  func.func @transform_5(%arg0: i32, %arg1: i32, %arg2: memref<2x4xi32, #tpu.memory_space<smem>>) -> (i32, i32) {
    %c0_i32 = arith.constant 0 : i32
    %c0_i32_0 = arith.constant 0 : i32
    return %arg0, %c0_i32 : i32, i32
  }
}

</mosaic_0001>

<bundles_post_ra>
// kernel: moe_feedforward.2
= control target key start
LH: loop header
LB: loop body
LE: loop exit
PB: predicated region body
PF: predicated region fallthrough
CT: control target
= control target key end

     0   :  { %s603_s9 = smov 0   ;;  %s701_s0 = inlined_call_operand.vmem [shape: f32[128,128], index: 0, kind: input, shape index: {}]   ;;  %s702_s1 = inlined_call_operand.vmem [shape: f32[128,4], index: 1, kind: input, shape index: {}]   ;;  %s703_s2 = inlined_call_operand.vmem [shape: f32[128,4], index: 2, kind: output, shape index: {}]  }
   0x1 LB: > { %s429_s10 = sadd.s32 4294967295, %s586_s9   ;;  %p433_p0 = scmp.ge.s32.totalorder %s586_s9, 1  ;;  %s586_s9 = sphi %s603_s9, %s12_s9  }
   0x2   : > { %p113_p1 = scmp.lt.s32.totalorder %s586_s9, 3 }
   0x4   : > { %p114_p2 = pnand %p433_p0, %p113_p1 }
   0x5   : > { %s434_s27 = sshll.u32 (!%p114_p2), %s429_s10, 3 }
   0x6   : > { %117 = sbr.rel (%p114_p2) target bundleno = 567 (0x237), region = 28  ;;  %p136_p3 = scmp.lt.s32.totalorder (!%p114_p2), %s434_s27, 15 }
   0xb   : > { %v170_v0 = vld [vmem:[%s702_s1 + $0x78] sm:$0xff]  ;;  %v169_v1 = vld [vmem:[%s702_s1 + $0x70] sm:$0xff]  ;;  %v168_v2 = vld [vmem:[%s702_s1 + $0x68] sm:$0xff]  ;;  %s705_s27 = smov (!%p136_p3, %s434_s27), 15  ;;  %vm276_vm0 = vcmask 31744  }
   0xc   : > { %464 = vmatprep.subr.mxu0 %v170_v0  ;;  %508 = vmatprep.subr.mxu1 %v170_v0  ;;  %v167_v3 = vld [vmem:[%s702_s1 + $0x60] sm:$0xff]  ;;  %v166_v4 = vld [vmem:[%s702_s1 + $0x58] sm:$0xff]  ;;  %v165_v5 = vld [vmem:[%s702_s1 + $0x50] sm:$0xff]  ;;  %s435_s13 = sshll.u32 %s705_s27, 3 }
   0xd   : > { %465 = vmatpush3.msra.mxu0 %v170_v0  ;;  %524 = vmatpush3.msra.mxu1 %v170_v0  ;;  %v164_v6 = vld [vmem:[%s702_s1 + $0x48] sm:$0xff]  ;;  %v163_v7 = vld [vmem:[%s702_s1 + $0x40] sm:$0xff]  ;;  %v162_v8 = vld [vmem:[%s702_s1 + $0x38] sm:$0xff]  ;;  %s139_s18 = scalar_lea.vmem %s701_s0, %s435_s13  ;;  %s145_s23 = scalar_lea.vmem %s703_s2, %s435_s13 }
   0xe   : > { %466 = vmatprep.subr.mxu0 %v169_v1  ;;  %509 = vmatprep.subr.mxu1 %v169_v1  ;;  %v161_v9 = vld [vmem:[%s702_s1 + $0x30] sm:$0xff]  ;;  %v160_v10 = vld [vmem:[%s702_s1 + $0x28] sm:$0xff]  ;;  %v159_v11 = vld [vmem:[%s702_s1 + $0x20] sm:$0xff] }
   0xf   : > { %467 = vmatpush3.msra.mxu0 %v169_v1  ;;  %525 = vmatpush3.msra.mxu1 %v169_v1  ;;  %v158_v12 = vld [vmem:[%s702_s1 + $0x18] sm:$0xff]  ;;  %v157_v13 = vld [vmem:[%s702_s1 + $0x10] sm:$0xff]  ;;  %v156_v14 = vld [vmem:[%s702_s1 + $0x8] sm:$0xff] }
  0x10   : > { %468 = vmatprep.subr.mxu0 %v168_v2  ;;  %510 = vmatprep.subr.mxu1 %v168_v2  ;;  %v155_v15 = vld [vmem:[%s702_s1] sm:$0xff]  ;;  %v148_v18 = vld [vmem:[%s139_s18 + $0x8] sm:$0xff]  ;;  %v149_v20 = vld [vmem:[%s139_s18 + $0x10] sm:$0xff] }
  0x11   : > { %469 = vmatpush3.msra.mxu0 %v168_v2  ;;  %526 = vmatpush3.msra.mxu1 %v168_v2  ;;  %v147_v16 = vld [vmem:[%s139_s18] sm:$0xff]  ;;  %v152_v19 = vld [vmem:[%s139_s18 + $0x28] sm:$0xff]  ;;  %v153_v21 = vld [vmem:[%s139_s18 + $0x30] sm:$0xff] }
  0x12   : > { %470 = vmatprep.subr.mxu0 %v167_v3  ;;  %511 = vmatprep.subr.mxu1 %v167_v3  ;;  %v151_v17 = vld [vmem:[%s139_s18 + $0x20] sm:$0xff]  ;;  %v150_v22 = vld [vmem:[%s139_s18 + $0x18] sm:$0xff] }
  0x13   : > { %471 = vmatpush3.msra.mxu0 %v167_v3  ;;  %527 = vmatpush3.msra.mxu1 %v167_v3  ;;  %v154_v23 = vld [vmem:[%s139_s18 + $0x38] sm:$0xff] }
  0x14   : > { %472 = vmatprep.subr.mxu0 %v166_v4  ;;  %512 = vmatprep.subr.mxu1 %v166_v4 }
  0x15   : > { %473 = vmatpush3.msra.mxu0 %v166_v4  ;;  %528 = vmatpush3.msra.mxu1 %v166_v4 }
  0x16   : > { %474 = vmatprep.subr.mxu0 %v165_v5  ;;  %513 = vmatprep.subr.mxu1 %v165_v5 }
  0x17   : > { %475 = vmatpush3.msra.mxu0 %v165_v5  ;;  %529 = vmatpush3.msra.mxu1 %v165_v5 }
  0x18   : > { %476 = vmatprep.subr.mxu0 %v164_v6  ;;  %514 = vmatprep.subr.mxu1 %v164_v6 }
  0x19   : > { %477 = vmatpush3.msra.mxu0 %v164_v6  ;;  %530 = vmatpush3.msra.mxu1 %v164_v6 }
  0x1a   : > { %478 = vmatprep.subr.mxu0 %v163_v7  ;;  %515 = vmatprep.subr.mxu1 %v163_v7 }
  0x1b   : > { %479 = vmatpush3.msra.mxu0 %v163_v7  ;;  %531 = vmatpush3.msra.mxu1 %v163_v7 }
  0x1c   : > { %480 = vmatprep.subr.mxu0 %v162_v8  ;;  %516 = vmatprep.subr.mxu1 %v162_v8 }
  0x1d   : > { %481 = vmatpush3.msra.mxu0 %v162_v8  ;;  %532 = vmatpush3.msra.mxu1 %v162_v8 }
  0x1e   : > { %482 = vmatprep.subr.mxu0 %v161_v9  ;;  %517 = vmatprep.subr.mxu1 %v161_v9 }
  0x1f   : > { %483 = vmatpush3.msra.mxu0 %v161_v9  ;;  %533 = vmatpush3.msra.mxu1 %v161_v9 }
  0x20   : > { %484 = vmatprep.subr.mxu0 %v160_v10  ;;  %518 = vmatprep.subr.mxu1 %v160_v10 }
  0x21   : > { %485 = vmatpush3.msra.mxu0 %v160_v10  ;;  %534 = vmatpush3.msra.mxu1 %v160_v10 }
  0x22   : > { %486 = vmatprep.subr.mxu0 %v159_v11  ;;  %519 = vmatprep.subr.mxu1 %v159_v11 }
  0x23   : > { %487 = vmatpush3.msra.mxu0 %v159_v11  ;;  %535 = vmatpush3.msra.mxu1 %v159_v11 }
  0x24   : > { %488 = vmatprep.subr.mxu0 %v158_v12  ;;  %520 = vmatprep.subr.mxu1 %v158_v12 }
  0x25   : > { %489 = vmatpush3.msra.mxu0 %v158_v12  ;;  %536 = vmatpush3.msra.mxu1 %v158_v12 }
  0x26   : > { %490 = vmatprep.subr.mxu0 %v157_v13  ;;  %521 = vmatprep.subr.mxu1 %v157_v13 }
  0x27   : > { %491 = vmatpush3.msra.mxu0 %v157_v13  ;;  %537 = vmatpush3.msra.mxu1 %v157_v13 }
  0x28   : > { %492 = vmatprep.subr.mxu0 %v156_v14  ;;  %522 = vmatprep.subr.mxu1 %v156_v14 }
  0x29   : > { %493 = vmatpush3.msra.mxu0 %v156_v14  ;;  %538 = vmatpush3.msra.mxu1 %v156_v14 }
  0x2a   : > { %494 = vmatprep.subr.mxu0 %v155_v15  ;;  %523 = vmatprep.subr.mxu1 %v155_v15 }
  0x2b   : > { %495 = vmatpush3.msra.mxu0 %v155_v15  ;;  %539 = vmatpush3.msra.mxu1 %v155_v15 }
  0x2c   : > { %496 = vmatprep.mubr.f32.mxu0 %v147_v16  ;;  %502 = vmatprep.mubr.f32.mxu1 %v151_v17 }
  0x2d   : > { %497 = vmatmul.mubr.f32.vlgmr.msra.gmra.mxu0 %v148_v18  ;;  %503 = vmatmul.mubr.f32.vlgmr.msra.gmra.mxu1 %v152_v19 }
  0x2e   : > { %499 = vmatprep.mubr.f32.mxu0 %v149_v20  ;;  %505 = vmatprep.mubr.f32.mxu1 %v153_v21 }
  0x31   : > { %500 = vmatmul.mubr.f32.gmra.mxu0 %v150_v22  ;;  %506 = vmatmul.mubr.f32.gmra.mxu1 %v154_v23 }
  0xed   : > { %v498_v24 = vpop.f32.mrf.mxu0  ;;  %v504_v25 = vpop.f32.mrf.mxu1 }
  0xee   : > { %v292_v26 = vsel %vm276_vm0, %v504_v25, -inf  ;;  %v280_v27 = vsel %vm276_vm0, %v498_v24, -inf }
  0xef   : > { %293 = vmax.xlane.f32.xlu1 %v292_v26  ;;  %281 = vmax.xlane.f32.xlu0 %v280_v27  ;;  %v237_v28 = vpop.f32.mrf.mxu0  ;;  %v257_v29 = vpop.f32.mrf.mxu1 }
  0xf0   : > { %v277_v32 = vsel %vm276_vm0, %v237_v28, -inf  ;;  %v289_v37 = vsel %vm276_vm0, %v257_v29, -inf }
  0xf1   : > { %v501_v30 = vpop.f32.mrf.mxu0  ;;  %v507_v31 = vpop.f32.mrf.mxu1 }
  0xf2   : > { %v286_v33 = vsel %vm276_vm0, %v501_v30, -inf  ;;  %v298_v39 = vsel %vm276_vm0, %v507_v31, -inf }
  0xf3   : > { %278 = vmax.xlane.f32.xlu0 %v277_v32  ;;  %287 = vmax.xlane.f32.xlu1 %v286_v33  ;;  %v247_v34 = vpop.f32.mrf.mxu0  ;;  %v267_v36 = vpop.f32.mrf.mxu1 }
  0xf4   : > { %v283_v35 = vsel %vm276_vm0, %v247_v34, -inf  ;;  %v295_v38 = vsel %vm276_vm0, %v267_v36, -inf }
  0xf7   : > { %290 = vmax.xlane.f32.xlu0 %v289_v37  ;;  %284 = vmax.xlane.f32.xlu1 %v283_v35 }
  0xfb   : > { %296 = vmax.xlane.f32.xlu0 %v295_v38  ;;  %299 = vmax.xlane.f32.xlu1 %v298_v39 }
 0x178   : > { %v294_v40 = vpop.xlane.xlu1 %293  ;;  %v282_v41 = vpop.xlane.xlu0 %281 }
 0x179   : > { %v306_v42 = vsub.f32 %v504_v25, %v294_v40  ;;  %v302_v43 = vsub.f32 %v498_v24, %v282_v41 }
 0x17b   : > { %v311_v44 = vmul.f32 1.442695, %v302_v43  ;;  %v319_v45 = vmul.f32 1.442695, %v306_v42 }
 0x17c   : > { %v279_v46 = vpop.xlane.xlu0 %278  ;;  %v288_v47 = vpop.xlane.xlu1 %287 }
 0x17d   : > { %v301_v48 = vsub.f32 %v237_v28, %v279_v46  ;;  %v304_v49 = vsub.f32 %v501_v30, %v288_v47  ;;  %548 = vpow2.f32 %v311_v44 }
 0x17e   : > { %550 = vpow2.f32 %v319_v45 }
 0x17f   : > { %v309_v50 = vmul.f32 1.442695, %v301_v48  ;;  %v315_v51 = vmul.f32 1.442695, %v304_v49 }
 0x180   : > { %v291_v52 = vpop.xlane.xlu0 %290  ;;  %v285_v53 = vpop.xlane.xlu1 %284 }
 0x181   : > { %552 = vpow2.f32 %v309_v50  ;;  %v305_v54 = vsub.f32 %v257_v29, %v291_v52  ;;  %v303_v55 = vsub.f32 %v247_v34, %v285_v53 }
 0x182   : > { %554 = vpow2.f32 %v315_v51 }
 0x183   : > { %v317_v56 = vmul.f32 1.442695, %v305_v54  ;;  %v313_v57 = vmul.f32 1.442695, %v303_v55 }
 0x184   : > { %v297_v58 = vpop.xlane.xlu0 %296  ;;  %v300_v59 = vpop.xlane.xlu1 %299 }
 0x185   : > { %556 = vpow2.f32 %v317_v56  ;;  %v307_v60 = vsub.f32 %v267_v36, %v297_v58  ;;  %v308_v61 = vsub.f32 %v507_v31, %v300_v59 }
 0x186   : > { %558 = vpow2.f32 %v313_v57 }
 0x187   : > { %v321_v62 = vmul.f32 1.442695, %v307_v60  ;;  %v323_v63 = vmul.f32 1.442695, %v308_v61 }
 0x189   : > { %560 = vpow2.f32 %v323_v63 }
 0x18a   : > { %v549_v0 = vpop.eup %548  ;;  %562 = vpow2.f32 %v321_v62 }
 0x18b   : > { %v328_v1 = vsel %vm276_vm0, %v549_v0, 0.0  ;;  %v551_v2 = vpop.eup %550 }
 0x18c   : > { %329 = vadd.xlane.f32.xlu1 %v328_v1  ;;  %v340_v5 = vsel %vm276_vm0, %v551_v2, 0.0 }
 0x18e   : > { %v553_v3 = vpop.eup %552 }
 0x18f   : > { %v325_v4 = vsel %vm276_vm0, %v553_v3, 0.0  ;;  %v555_v6 = vpop.eup %554 }
 0x190   : > { %326 = vadd.xlane.f32.xlu0 %v325_v4  ;;  %341 = vadd.xlane.f32.xlu1 %v340_v5  ;;  %v334_v10 = vsel %vm276_vm0, %v555_v6, 0.0 }
 0x192   : > { %v557_v7 = vpop.eup %556 }
 0x193   : > { %v337_v8 = vsel %vm276_vm0, %v557_v7, 0.0  ;;  %v559_v9 = vpop.eup %558 }
 0x194   : > { %338 = vadd.xlane.f32.xlu0 %v337_v8  ;;  %335 = vadd.xlane.f32.xlu1 %v334_v10  ;;  %v331_v12 = vsel %vm276_vm0, %v559_v9, 0.0 }
 0x196   : > { %v561_v11 = vpop.eup %560 }
 0x197   : > { %v563_v13 = vpop.eup %562  ;;  %v346_v14 = vsel %vm276_vm0, %v561_v11, 0.0 }
 0x198   : > { %332 = vadd.xlane.f32.xlu0 %v331_v12  ;;  %347 = vadd.xlane.f32.xlu1 %v346_v14  ;;  %v343_v15 = vsel %vm276_vm0, %v563_v13, 0.0 }
 0x19c   : > { %344 = vadd.xlane.f32.xlu0 %v343_v15 }
 0x215   : > { %v330_v16 = vpop.xlane.xlu1 %329 }
 0x216   : > { %564 = vrcp.f32 %v330_v16 }
 0x219   : > { %v327_v17 = vpop.xlane.xlu0 %326  ;;  %v342_v18 = vpop.xlane.xlu1 %341 }
 0x21a   : > { %566 = vrcp.f32 %v327_v17 }
 0x21b   : > { %568 = vrcp.f32 %v342_v18 }
 0x21d   : > { %v339_v19 = vpop.xlane.xlu0 %338  ;;  %v336_v20 = vpop.xlane.xlu1 %335 }
 0x21e   : > { %570 = vrcp.f32 %v339_v19 }
 0x21f   : > { %572 = vrcp.f32 %v336_v20 }
 0x221   : > { %v333_v21 = vpop.xlane.xlu0 %332  ;;  %v348_v22 = vpop.xlane.xlu1 %347 }
 0x222   : > { %574 = vrcp.f32 %v333_v21 }
 0x223   : > { %576 = vrcp.f32 %v348_v22  ;;  %v565_v23 = vpop.eup %564 }
 0x224   : > { %v352_v24 = vmul.f32 %v565_v23, %v549_v0 }
 0x225   : > { %v345_v25 = vpop.xlane.xlu0 %344 }
 0x226   : > { %578 = vrcp.f32 %v345_v25  ;;  %366 = vst.msk [vmem:[%s145_s23 + $0x8] sm:$0xff] %vm276_vm0, %v352_v24 }
 0x227   : > { %v567_v26 = vpop.eup %566 }
 0x228   : > { %v569_v27 = vpop.eup %568  ;;  %v350_v28 = vmul.f32 %v567_v26, %v553_v3 }
 0x229   : > { %v360_v29 = vmul.f32 %v569_v27, %v551_v2 }
 0x22a   : > { %365 = vst.msk [vmem:[%s145_s23] sm:$0xff] %vm276_vm0, %v350_v28 }
 0x22b   : > { %v571_v30 = vpop.eup %570  ;;  %370 = vst.msk [vmem:[%s145_s23 + $0x28] sm:$0xff] %vm276_vm0, %v360_v29 }
 0x22c   : > { %v573_v31 = vpop.eup %572  ;;  %v358_v32 = vmul.f32 %v571_v30, %v557_v7 }
 0x22d   : > { %v356_v33 = vmul.f32 %v573_v31, %v555_v6 }
 0x22e   : > { %369 = vst.msk [vmem:[%s145_s23 + $0x20] sm:$0xff] %vm276_vm0, %v358_v32 }
 0x22f   : > { %v575_v34 = vpop.eup %574  ;;  %368 = vst.msk [vmem:[%s145_s23 + $0x18] sm:$0xff] %vm276_vm0, %v356_v33 }
 0x230   : > { %v577_v35 = vpop.eup %576  ;;  %v354_v36 = vmul.f32 %v575_v34, %v559_v9 }
 0x231   : > { %v364_v37 = vmul.f32 %v577_v35, %v561_v11 }
 0x232   : > { %367 = vst.msk [vmem:[%s145_s23 + $0x10] sm:$0xff] %vm276_vm0, %v354_v36 }
 0x233   : > { %v579_v38 = vpop.eup %578  ;;  %372 = vst.msk [vmem:[%s145_s23 + $0x38] sm:$0xff] %vm276_vm0, %v364_v37 }
 0x234   : > { %v362_v39 = vmul.f32 %v579_v38, %v563_v13 }
 0x236   : > { %371 = vst.msk [vmem:[%s145_s23 + $0x30] sm:$0xff] %vm276_vm0, %v362_v39 }
 0x237 PF: > { %s12_s9 = sadd.s32 1, %s586_s9  }
 0x238   : > { %p9_p4 = scmp.ge.s32.totalorder %s12_s9, 4  }
 0x23a   :  { %11 = sbr.rel (!%p9_p4) target bundleno = 1 (0x1), region = 58 }

// kernel: moe_feedforward.3
= control target key start
LH: loop header
LB: loop body
LE: loop exit
PB: predicated region body
PF: predicated region fallthrough
CT: control target
= control target key end

     0   :  { %s2692_s0 = inlined_call_operand.vmem [shape: s32[2,4], index: 0, kind: input, shape index: {}]   ;;  %s2693_s1 = inlined_call_operand.vmem [shape: f32[128,4], index: 1, kind: input, shape index: {}]   ;;  %s2694_s2 = inlined_call_operand.vmem [shape: f32[128,128], index: 2, kind: input, shape index: {}]   ;;  %s2695_s3 = inlined_call_operand.vmem [shape: bf16[4,128,384], index: 3, kind: input, shape index: {}]   ;;  %s2696_s4 = inlined_call_operand.vmem [shape: bf16[4,128,384], index: 4, kind: input, shape index: {}]   ;;  %s2697_s5 = inlined_call_operand.vmem [shape: bf16[4,384,128], index: 5, kind: input, shape index: {}]   ;;  %s2698_s6 = inlined_call_operand.hbm [shape: f32[128,128], index: 6, kind: output, shape index: {}]  }
   0x1   :  { %s11_s23 = sshll.u32 %s2692_s0, 4  ;;  %s12_s23 = int_to_ptr.vmem [resolvable:$true] %s11_s23 }
   0x2   :  { %s2096_s24 = scalar_lea.vmem %s12_s23, 32  ;;  %p2101_p1 = scmp.lt.s32.totalorder %s12_s23, %s12_s23 }
   0x3   :  { %p2097_p0 = scmp.ne.s32.totalorder %s12_s23, %s2096_s24  ;;  %p2102_p2 = scmp.lt.s32.totalorder %s2096_s24, %s2096_s24 }
   0x5   :  { %p2103_p3 = por %p2102_p2, %p2101_p1 }
   0x7   :  { %p2104_p4 = pnand %p2103_p3, %p2097_p0 }
   0x9   :  { %2107 = shalt.err (!%p2104_p4)  }
   0xa   :  { %s2204_s25 = smov [#allocation3]  }
   0xb   :  { %14 = dma.vmem_to_smem %s12_s23, 32, %s2204_s25, [#allocation2] }
   0xc   :  { %2166 = dma.done.wait [#allocation2], 32 }
   0xd   :  { %2167 = vsyncadd [#allocation2], 4294967264 }
   0xe   :  { %16 = sfence }
   0xf   :  { %17 = vsyncpa [#allocation5], 0 }
  0x10   :  { %19 = vsyncpa [#allocation5 + $0x1], 0  ;;  %s2248_s26 = smov 0   ;;  %s2250_s27 = smov 0  }
  0x11   :  { %s2252_s0 = smov 0   ;;  %s2254_s28 = smov 0  }
  0x12   :  { %s2256_s29 = smov 0   ;;  %s2258_s30 = smov 0  }
  0x13   :  { %s2260_s7 = smov 0   ;;  %s2262_s8 = smov 0  }
  0x14 LB: > { %s1591_s9 = sadd.s32 4294967295, %s2202_s8   ;;  %s1592_s10 = sadd.s32 4294967294, %s2202_s8   ;;  %s2202_s8 = sphi %s2262_s8, %s25_s8   ;;  %s2198_s7 = sphi %s2260_s7, %s2709_s7   ;;  %s2194_s30 = sphi %s2258_s30, %s2708_s30   ;;  %s2190_s29 = sphi %s2256_s29, %s2707_s29   ;;  %s2186_s28 = sphi %s2254_s28, %s2706_s28   ;;  %s2182_s0 = sphi %s2252_s0, %s2705_s0   ;;  %s2178_s27 = sphi %s2250_s27, %s2704_s27   ;;  %s2174_s26 = sphi %s2248_s26, %s2703_s26  }
  0x15   : > { %s34_s11 = sadd.s32 1, %s2194_s30  ;;  %s37_s12 = sadd.s32 1, %s2198_s7 }
  0x16   : > { %p35_p5 = scmp.ge.s32.totalorder %s34_s11, 4  ;;  %p169_p6 = scmp.ne.s32.totalorder %s2182_s0, %s2178_s27 }
  0x17   : > { %p170_p7 = scmp.eq.s32.totalorder %s1591_s9, 7  ;;  %p175_p9 = scmp.ne.s32.totalorder %s2178_s27, %s2174_s26 }
  0x18   : > { %s2711_s11 = smov (%p35_p5, %s34_s11), 0  ;;  %s2713_s12 = smov (!%p35_p5, %s37_s12), %s2198_s7 }
  0x19   : > { %p2297_p8 = por %p170_p7, %p169_p6  ;;  %p39_p10 = scmp.ge.s32.totalorder %s2713_s12, 2 }
  0x1a   : > { %p176_p11 = scmp.eq.s32.totalorder %s1592_s10, 7  ;;  %p1595_p12 = scmp.ge.s32.totalorder %s2202_s8, 1 }
  0x1b   : > { %p221_p13 = scmp.lt.s32.totalorder %s2202_s8, 9  ;;  %s2715_s12 = smov (%p39_p10, %s2713_s12), 0 }
  0x1c   : > { %p2307_p0 = por %p176_p11, %p175_p9  ;;  %s156_s15 = ssub.s32 %s2198_s7, %s2715_s12 }
  0x1d   : > { %p222_p1 = pnand %p1595_p12, %p221_p13  ;;  %s159_s16 = sadd.s32 1, %s2182_s0 }
  0x1e   : > { %p157_p2 = scmp.eq.s32.totalorder %s156_s15, 0  ;;  %s251_s18 = sand.u32 (!%p222_p1), 1, %s2178_s27  }
  0x1f   : > { %225 = sbr.rel (%p222_p1) target bundleno = 606 (0x25e), region = 40  ;;  %s1597_s19 = sshll.u32 (!%p222_p1), %s2190_s29, 3 }
  0x20   : > { %s2315_s17 = scalar_select %p157_p2, %s2182_s0, %s159_s16  }
  0x21   : > { %s1596_s20 = sshll.u32 (!%p222_p1), %s251_s18, 6  ;;  %p255_p3 = scmp.lt.s32.totalorder (!%p222_p1), %s1597_s19, 15 }
  0x22   : > { %s2331_s15 = scalar_lea.vmem (!%p222_p1), [#allocation4], %s1596_s20  ;;  %p1601_p4 = scmp.ne.s32.totalorder (!%p222_p1), %s2186_s28, 0 }
  0x24   : > { %s2717_s19 = smov (!%p255_p3, %s1597_s19), 15  ;;  %271 = sbr.rel (%p1601_p4) target bundleno = 46 (0x2e), region = 44 }
  0x25   : > { %s1598_s21 = sshll.u32 %s2717_s19, 3 }
  0x26   : > { %s2324_s24 = scalar_lea.vmem %s2693_s1, %s1598_s21  ;;  %s2329_s10 = scalar_lea.vmem %s2694_s2, %s1598_s21 }
  0x29   : > { %v2205_v0 = vmov 0.0  }
  0x2a   : > { %272 = vst [vmem:[%s2331_s15] sm:$0xff] %v2205_v0  ;;  %273 = vst [vmem:[%s2331_s15 + $0x8] sm:$0xff] %v2205_v0 }
  0x2b   : > { %274 = vst [vmem:[%s2331_s15 + $0x10] sm:$0xff] %v2205_v0  ;;  %275 = vst [vmem:[%s2331_s15 + $0x18] sm:$0xff] %v2205_v0 }
  0x2c   : > { %276 = vst [vmem:[%s2331_s15 + $0x20] sm:$0xff] %v2205_v0  ;;  %277 = vst [vmem:[%s2331_s15 + $0x28] sm:$0xff] %v2205_v0 }
  0x2d   : > { %278 = vst [vmem:[%s2331_s15 + $0x30] sm:$0xff] %v2205_v0  ;;  %279 = vst [vmem:[%s2331_s15 + $0x38] sm:$0xff] %v2205_v0 }
  0x2e PF: > { %s280_s16 = sshra.s32 %s2186_s28, 7  ;;  %s285_s19 = sand.u32 127, %s2186_s28 }
  0x2f   : > { %s282_s20 = sadd.s32 %s2190_s29, %s280_s16 }
  0x30   : > { %s1602_s21 = sshll.u32 %s282_s20, 7 }
  0x31   : > { %s286_s22 = sadd.s32 %s1602_s21, %s285_s19 }
  0x32   : > { %s287_s23 = sld [smem:[#allocation3 + %s286_s22]] }
  0x38   : > { %p1603_p5 = scmp.le.s32.totalorder %s287_s23, 0 }
  0x39   : > { %s2346_s25 = smul.u32 (!%p1603_p5), 192, %s2186_s28 }
  0x3a   : > { %291 = sbr.rel (%p1603_p5) target bundleno = 582 (0x246), region = 48 }
  0x3b   : > { %s2357_s19 = scalar_lea.vmem (!%p1603_p5), %s2695_s3, %s2346_s25  ;;  %s2381_s22 = scalar_lea.vmem (!%p1603_p5), %s2696_s4, %s2346_s25 }
  0x3c   : > { %s2412_s16 = scalar_lea.vmem (!%p1603_p5), %s2697_s5, %s2346_s25 }
  0x3f   : > { %v292_v1 = vld [vmem:[%s2329_s10] sm:$0xff]  ;;  %v293_v2 = vld [vmem:[%s2329_s10 + $0x8] sm:$0xff]  ;;  %v2206_v3 = vmov 0   ;;  %v1914_v6 = vld [vmem:[%s2357_s19 + $0xb0] ss:$12 sps:$4 sm:$0xff]   ;;  %vm1429_vm0 = vcmask 31744  }
  0x40   : > { %499 = vmatprep.mubr.bf16.mxu0 %v2206_v3  ;;  %v2351_v4 = vpack.c.bf16 %v293_v2, %v292_v1  ;;  %v1912_v5 = vld [vmem:[%s2357_s19 + $0xac] ss:$12 sps:$4 sm:$0xff]   ;;  %v1915_v7 = vld [vmem:[%s2357_s19 + $0xa8] ss:$12 sps:$4 sm:$0xff]   ;;  %1764 = vmatprep.subr.bf16.mxu1 %v1914_v6  ;;  %v1919_v10 = vld [vmem:[%s2357_s19 + $0x90] ss:$12 sps:$4 sm:$0xff]  }
  0x41   : > { %467 = vmatprep.subr.bf16.mxu0 %v1912_v5  ;;  %v1916_v8 = vld [vmem:[%s2357_s19 + $0x94] ss:$12 sps:$4 sm:$0xff]   ;;  %1765 = vmatpush3.bf16.msra.mxu1 %v1914_v6  ;;  %v1918_v9 = vld [vmem:[%s2357_s19 + $0x98] ss:$12 sps:$4 sm:$0xff]   ;;  %v1920_v11 = vld [vmem:[%s2357_s19 + $0x7c] ss:$12 sps:$4 sm:$0xff]  }
  0x42   : > { %1780 = vmatprep.mubr.bf16.mxu1 %v2351_v4  ;;  %468 = vmatpush1.bf16.msra.mxu0 %v1915_v7  ;;  %v1922_v12 = vld [vmem:[%s2357_s19 + $0x80] ss:$12 sps:$4 sm:$0xff]   ;;  %v1923_v13 = vld [vmem:[%s2357_s19 + $0x78] ss:$12 sps:$4 sm:$0xff]   ;;  %v1926_v15 = vld [vmem:[%s2357_s19 + $0x68] ss:$12 sps:$4 sm:$0xff]  }
  0x43   : > { %469 = vmatprep.subr.bf16.mxu0 %v1916_v8  ;;  %1766 = vmatprep.subr.bf16.mxu1 %v1918_v9  ;;  %v1924_v14 = vld [vmem:[%s2357_s19 + $0x64] ss:$12 sps:$4 sm:$0xff]   ;;  %v1927_v16 = vld [vmem:[%s2357_s19 + $0x60] ss:$12 sps:$4 sm:$0xff]   ;;  %v1931_v19 = vld [vmem:[%s2357_s19 + $0x48] ss:$12 sps:$4 sm:$0xff]  }
  0x44   : > { %v1928_v17 = vld [vmem:[%s2357_s19 + $0x4c] ss:$12 sps:$4 sm:$0xff]   ;;  %v1930_v18 = vld [vmem:[%s2357_s19 + $0x50] ss:$12 sps:$4 sm:$0xff]   ;;  %v1932_v20 = vld [vmem:[%s2357_s19 + $0x34] ss:$12 sps:$4 sm:$0xff]  }
  0x45   : > { %1767 = vmatpush3.bf16.msra.mxu1 %v1918_v9  ;;  %v1934_v21 = vld [vmem:[%s2357_s19 + $0x38] ss:$12 sps:$4 sm:$0xff]   ;;  %v1935_v22 = vld [vmem:[%s2357_s19 + $0x30] ss:$12 sps:$4 sm:$0xff]   ;;  %v1938_v24 = vld [vmem:[%s2357_s19 + $0x20] ss:$12 sps:$4 sm:$0xff]  }
  0x46   : > { %470 = vmatpush1.bf16.msra.mxu0 %v1919_v10  ;;  %1768 = vmatprep.subr.bf16.mxu1 %v1922_v12  ;;  %v1936_v23 = vld [vmem:[%s2357_s19 + $0x1c] ss:$12 sps:$4 sm:$0xff]   ;;  %v1939_v25 = vld [vmem:[%s2357_s19 + $0x18] ss:$12 sps:$4 sm:$0xff]   ;;  %v294_v28 = vld [vmem:[%s2329_s10 + $0x10] sm:$0xff] }
  0x47   : > { %471 = vmatprep.subr.bf16.mxu0 %v1920_v11  ;;  %v1940_v26 = vld [vmem:[%s2357_s19 + $0x4] ss:$12 sps:$4 sm:$0xff]   ;;  %v1942_v27 = vld [vmem:[%s2357_s19 + $0x8] ss:$12 sps:$4 sm:$0xff]   ;;  %v295_v29 = vld [vmem:[%s2329_s10 + $0x18] sm:$0xff] }
  0x48   : > { %v1943_v30 = vld [vmem:[%s2357_s19] ss:$12 sps:$4 sm:$0xff]   ;;  %v1950_v32 = vld [vmem:[%s2381_s22 + $0xb0] ss:$12 sps:$4 sm:$0xff]   ;;  %v2395_v34 = vpack.c.bf16 %v295_v29, %v294_v28  ;;  %v1944_v36 = vld [vmem:[%s2381_s22 + $0xa8] ss:$12 sps:$4 sm:$0xff]  }
  0x49   : > { %1769 = vmatpush3.bf16.msra.mxu1 %v1922_v12  ;;  %v1946_v31 = vld [vmem:[%s2381_s22 + $0xac] ss:$12 sps:$4 sm:$0xff]   ;;  %v296_v33 = vld [vmem:[%s2329_s10 + $0x20] sm:$0xff]  ;;  %v298_v39 = vld [vmem:[%s2329_s10 + $0x30] sm:$0xff] }
  0x4a   : > { %472 = vmatpush1.bf16.msra.mxu0 %v1923_v13  ;;  %1770 = vmatprep.subr.bf16.mxu1 %v1926_v15  ;;  %v297_v35 = vld [vmem:[%s2329_s10 + $0x28] sm:$0xff]  ;;  %v1949_v37 = vld [vmem:[%s2381_s22 + $0x94] ss:$12 sps:$4 sm:$0xff]   ;;  %v299_v40 = vld [vmem:[%s2329_s10 + $0x38] sm:$0xff] }
  0x4b   : > { %473 = vmatprep.subr.bf16.mxu0 %v1924_v14  ;;  %v2400_v38 = vpack.c.bf16 %v297_v35, %v296_v33  ;;  %v1954_v41 = vld [vmem:[%s2381_s22 + $0x98] ss:$12 sps:$4 sm:$0xff]   ;;  %v1947_v42 = vld [vmem:[%s2381_s22 + $0x90] ss:$12 sps:$4 sm:$0xff]   ;;  %v1958_v44 = vld [vmem:[%s2381_s22 + $0x80] ss:$12 sps:$4 sm:$0xff]   ;;  %v303_v46 = vpack.c.bf16 %v299_v40, %v298_v39 }
  0x4c   : > { %v1953_v43 = vld [vmem:[%s2381_s22 + $0x7c] ss:$12 sps:$4 sm:$0xff]   ;;  %v1951_v45 = vld [vmem:[%s2381_s22 + $0x78] ss:$12 sps:$4 sm:$0xff]   ;;  %v1955_v49 = vld [vmem:[%s2381_s22 + $0x60] ss:$12 sps:$4 sm:$0xff]  }
  0x4d   : > { %1771 = vmatpush3.bf16.msra.mxu1 %v1926_v15  ;;  %v1957_v47 = vld [vmem:[%s2381_s22 + $0x64] ss:$12 sps:$4 sm:$0xff]   ;;  %v1962_v48 = vld [vmem:[%s2381_s22 + $0x68] ss:$12 sps:$4 sm:$0xff]   ;;  %v1961_v50 = vld [vmem:[%s2381_s22 + $0x4c] ss:$12 sps:$4 sm:$0xff]  }
  0x4e   : > { %474 = vmatpush1.bf16.msra.mxu0 %v1927_v16  ;;  %1772 = vmatprep.subr.bf16.mxu1 %v1930_v18  ;;  %v1966_v51 = vld [vmem:[%s2381_s22 + $0x50] ss:$12 sps:$4 sm:$0xff]   ;;  %v1959_v52 = vld [vmem:[%s2381_s22 + $0x48] ss:$12 sps:$4 sm:$0xff]   ;;  %v1970_v54 = vld [vmem:[%s2381_s22 + $0x38] ss:$12 sps:$4 sm:$0xff]  }
  0x4f   : > { %475 = vmatprep.subr.bf16.mxu0 %v1928_v17  ;;  %v1965_v53 = vld [vmem:[%s2381_s22 + $0x34] ss:$12 sps:$4 sm:$0xff]   ;;  %v1963_v55 = vld [vmem:[%s2381_s22 + $0x30] ss:$12 sps:$4 sm:$0xff]   ;;  %v1967_v58 = vld [vmem:[%s2381_s22 + $0x18] ss:$12 sps:$4 sm:$0xff]  }
  0x50   : > { %v1969_v56 = vld [vmem:[%s2381_s22 + $0x1c] ss:$12 sps:$4 sm:$0xff]   ;;  %v1974_v57 = vld [vmem:[%s2381_s22 + $0x20] ss:$12 sps:$4 sm:$0xff]   ;;  %v1973_v59 = vld [vmem:[%s2381_s22 + $0x4] ss:$12 sps:$4 sm:$0xff]  }
  0x51   : > { %1773 = vmatpush3.bf16.msra.mxu1 %v1930_v18  ;;  %v1975_v60 = vld [vmem:[%s2381_s22 + $0x8] ss:$12 sps:$4 sm:$0xff]   ;;  %v1971_v61 = vld [vmem:[%s2381_s22] ss:$12 sps:$4 sm:$0xff]   ;;  %v1976_v62 = vld [vmem:[%s2412_s16 + $0x78] sm:$0xff]  }
  0x52   : > { %476 = vmatpush1.bf16.msra.mxu0 %v1931_v19  ;;  %1774 = vmatprep.subr.bf16.mxu1 %v1934_v21  ;;  %v1978_v63 = vld [vmem:[%s2412_s16 + $0xb8] sm:$0xff]   ;;  %v1979_v1 = vld [vmem:[%s2412_s16 + $0x70] sm:$0xff]   ;;  %v1984_v5 = vld [vmem:[%s2412_s16 + $0xa8] sm:$0xff]  }
  0x53   : > { %477 = vmatprep.subr.bf16.mxu0 %v1932_v20  ;;  %v1977_v0 = vld [vmem:[%s2412_s16 + $0x38] sm:$0xff]   ;;  %v1981_v2 = vld [vmem:[%s2412_s16 + $0xb0] sm:$0xff]   ;;  %v1983_v6 = vld [vmem:[%s2412_s16 + $0x28] sm:$0xff]  }
  0x54   : > { %v1985_v7 = vld [vmem:[%s2412_s16 + $0x60] sm:$0xff]   ;;  %v1988_v10 = vld [vmem:[%s2412_s16 + $0x58] sm:$0xff]   ;;  %v1991_v13 = vld [vmem:[%s2412_s16 + $0x50] sm:$0xff]  }
  0x55   : > { %1775 = vmatpush3.bf16.msra.mxu1 %v1934_v21  ;;  %v1987_v8 = vld [vmem:[%s2412_s16 + $0xa0] sm:$0xff]   ;;  %v1990_v11 = vld [vmem:[%s2412_s16 + $0x98] sm:$0xff]   ;;  %v1993_v14 = vld [vmem:[%s2412_s16 + $0x90] sm:$0xff]  }
  0x56   : > { %478 = vmatpush1.bf16.msra.mxu0 %v1935_v22  ;;  %1776 = vmatprep.subr.bf16.mxu1 %v1938_v24  ;;  %v1986_v9 = vld [vmem:[%s2412_s16 + $0x20] sm:$0xff]   ;;  %v1989_v12 = vld [vmem:[%s2412_s16 + $0x18] sm:$0xff]   ;;  %v1992_v15 = vld [vmem:[%s2412_s16 + $0x10] sm:$0xff]   ;;  %v1417_v22 = vlaneseq }
  0x57   : > { %479 = vmatprep.subr.bf16.mxu0 %v1936_v23  ;;  %v1994_v16 = vld [vmem:[%s2412_s16 + $0x48] sm:$0xff]   ;;  %v1997_v19 = vld [vmem:[%s2412_s16 + $0x40] sm:$0xff]   ;;  %v1412_v28 = vld [vmem:[%s2324_s24 + $0x18] sm:$0xff] }
  0x58   : > { %v1996_v17 = vld [vmem:[%s2412_s16 + $0x88] sm:$0xff]   ;;  %v1999_v20 = vld [vmem:[%s2412_s16 + $0x80] sm:$0xff]  }
  0x59   : > { %1777 = vmatpush3.bf16.msra.mxu1 %v1938_v24  ;;  %v1995_v18 = vld [vmem:[%s2412_s16 + $0x8] sm:$0xff]   ;;  %v1998_v21 = vld [vmem:[%s2412_s16] sm:$0xff]   ;;  %v1419_v24 = vstv %s2186_s28 }
  0x5a   : > { %480 = vmatpush1.bf16.msra.mxu0 %v1939_v25  ;;  %1778 = vmatprep.subr.bf16.mxu1 %v1942_v27  ;;  %v1409_v23 = vld [vmem:[%s2324_s24] sm:$0xff]  ;;  %v1418_v25 = vand.u32 127, %v1417_v22 }
  0x5b   : > { %481 = vmatprep.subr.bf16.mxu0 %v1940_v26  ;;  %v1410_v26 = vld [vmem:[%s2324_s24 + $0x8] sm:$0xff] }
  0x5c   : > { %vm2477_vm1 = vcmp.eq.s32.totalorder %v1418_v25, %v1419_v24 }
  0x5d   : > { %1779 = vmatpush3.bf16.msra.mxu1 %v1942_v27  ;;  %v1411_v27 = vld [vmem:[%s2324_s24 + $0x10] sm:$0xff]  ;;  %v1424_v33 = vsel %vm2477_vm1, %v1412_v28, 0.0 }
  0x5e   : > { %482 = vmatpush1.bf16.msra.mxu0 %v1943_v30  ;;  %1788 = vmatprep.subr.bf16.mxu1 %v1950_v32  ;;  %v1421_v30 = vsel %vm2477_vm1, %v1409_v23, 0.0  ;;  %v1439_v39 = vsel %vm1429_vm0, %v1424_v33, 0.0 }
  0x5f   : > { %767 = vmatprep.subr.bf16.mxu0 %v1946_v31  ;;  %v1422_v31 = vsel %vm2477_vm1, %v1410_v26, 0.0 }
  0x60   : > { %1781 = vmatmul.mubr.bf16.vlgmr.msra.gmra.mxu1 %v2395_v34 }
  0x61   : > { %500 = vmatmul.mubr.bf16.vlgmr.msra.gmra.mxu0 %v2351_v4  ;;  %1789 = vmatpush3.bf16.msra.mxu1 %v1950_v32  ;;  %v1423_v32 = vsel %vm2477_vm1, %v1411_v27, 0.0 }
  0x62   : > { %768 = vmatpush1.bf16.msra.mxu0 %v1944_v36  ;;  %509 = vmatprep.mubr.bf16.mxu0 %v2206_v3  ;;  %v1436_v35 = vsel %vm1429_vm0, %v1423_v32, 0.0  ;;  %v1413_v36 = vld [vmem:[%s2324_s24 + $0x20] sm:$0xff] }
  0x63   : > { %769 = vmatprep.subr.bf16.mxu0 %v1949_v37  ;;  %1784 = vmatprep.mubr.bf16.mxu1 %v2400_v38  ;;  %v1414_v37 = vld [vmem:[%s2324_s24 + $0x28] sm:$0xff]  ;;  %v1425_v40 = vsel %vm2477_vm1, %v1413_v36, 0.0 }
  0x64   : > { %1790 = vmatprep.subr.bf16.mxu1 %v1954_v41  ;;  %1437 = vadd.xlane.f32.xlu1 %v1436_v35 }
  0x65   : > { %1791 = vmatpush3.bf16.msra.mxu1 %v1954_v41  ;;  %v1426_v41 = vsel %vm2477_vm1, %v1414_v37, 0.0 }
  0x66   : > { %770 = vmatpush1.bf16.msra.mxu0 %v1947_v42  ;;  %1792 = vmatprep.subr.bf16.mxu1 %v1958_v44  ;;  %v1415_v42 = vld [vmem:[%s2324_s24 + $0x30] sm:$0xff] }
  0x67   : > { %771 = vmatprep.subr.bf16.mxu0 %v1953_v43  ;;  %v1416_v43 = vld [vmem:[%s2324_s24 + $0x38] sm:$0xff] }
  0x68   : > { %1785 = vmatmul.mubr.bf16.gmra.mxu1 %v303_v46  ;;  %1440 = vadd.xlane.f32.xlu1 %v1439_v39 }
  0x69   : > { %510 = vmatmul.mubr.bf16.gmra.mxu0 %v2395_v34  ;;  %1793 = vmatpush3.bf16.msra.mxu1 %v1958_v44  ;;  %v1442_v44 = vsel %vm1429_vm0, %v1425_v40, 0.0 }
  0x6a   : > { %772 = vmatpush1.bf16.msra.mxu0 %v1951_v45  ;;  %519 = vmatprep.mubr.bf16.mxu0 %v2206_v3  ;;  %v1445_v45 = vsel %vm1429_vm0, %v1426_v41, 0.0 }
  0x6b   : > { %773 = vmatprep.subr.bf16.mxu0 %v1957_v47  ;;  %1794 = vmatprep.subr.bf16.mxu1 %v1962_v48  ;;  %v1428_v47 = vsel %vm2477_vm1, %v1416_v43, 0.0 }
  0x6c   : > { %1804 = vmatprep.mubr.bf16.mxu1 %v2351_v4  ;;  %1446 = vadd.xlane.f32.xlu1 %v1445_v45 }
  0x6d   : > { %1795 = vmatpush3.bf16.msra.mxu1 %v1962_v48 }
  0x6e   : > { %774 = vmatpush1.bf16.msra.mxu0 %v1955_v49  ;;  %1796 = vmatprep.subr.bf16.mxu1 %v1966_v51  ;;  %v1451_v49 = vsel %vm1429_vm0, %v1428_v47, 0.0 }
  0x6f   : > { %775 = vmatprep.subr.bf16.mxu0 %v1961_v50 }
  0x70   : > { %1452 = vadd.xlane.f32.xlu1 %v1451_v49 }
  0x71   : > { %520 = vmatmul.mubr.bf16.gmra.mxu0 %v2400_v38  ;;  %1797 = vmatpush3.bf16.msra.mxu1 %v1966_v51 }
  0x72   : > { %776 = vmatpush1.bf16.msra.mxu0 %v1959_v52  ;;  %529 = vmatprep.mubr.bf16.mxu0 %v2206_v3 }
  0x73   : > { %777 = vmatprep.subr.bf16.mxu0 %v1965_v53  ;;  %1798 = vmatprep.subr.bf16.mxu1 %v1970_v54 }
  0x75   : > { %1799 = vmatpush3.bf16.msra.mxu1 %v1970_v54 }
  0x76   : > { %778 = vmatpush1.bf16.msra.mxu0 %v1963_v55  ;;  %1800 = vmatprep.subr.bf16.mxu1 %v1974_v57 }
  0x77   : > { %779 = vmatprep.subr.bf16.mxu0 %v1969_v56 }
  0x79   : > { %530 = vmatmul.mubr.bf16.gmra.mxu0 %v303_v46  ;;  %1801 = vmatpush3.bf16.msra.mxu1 %v1974_v57 }
  0x7a   : > { %780 = vmatpush1.bf16.msra.mxu0 %v1967_v58  ;;  %799 = vmatprep.mubr.bf16.mxu0 %v2206_v3 }
  0x7b   : > { %781 = vmatprep.subr.bf16.mxu0 %v1973_v59  ;;  %1802 = vmatprep.subr.bf16.mxu1 %v1975_v60 }
  0x7d   : > { %1803 = vmatpush3.bf16.msra.mxu1 %v1975_v60 }
  0x7e   : > { %782 = vmatpush1.bf16.msra.mxu0 %v1971_v61  ;;  %1812 = vmatprep.subr.bf16.mxu1 %v1978_v63 }
  0x7f   : > { %1712 = vmatprep.subr.bf16.mxu0 %v1976_v62 }
  0x80   : > { %1805 = vmatmul.mubr.bf16.vlgmr.msra.gmra.mxu1 %v2395_v34 }
  0x81   : > { %800 = vmatmul.mubr.bf16.vlgmr.msra.gmra.mxu0 %v2351_v4  ;;  %1808 = vmatprep.mubr.bf16.mxu1 %v2400_v38  ;;  %v1980_v4 = vld [vmem:[%s2412_s16 + $0x30] sm:$0xff]  }
  0x82   : > { %809 = vmatprep.mubr.bf16.mxu0 %v2206_v3  ;;  %1713 = vmatpush3.bf16.msra.mxu0 %v1977_v0 }
  0x83   : > { %1813 = vmatpush3.bf16.msra.mxu1 %v1978_v63  ;;  %1714 = vmatprep.subr.bf16.mxu0 %v1979_v1 }
  0x84   : > { %1814 = vmatprep.subr.bf16.mxu1 %v1981_v2 }
  0x86   : > { %1715 = vmatpush3.bf16.msra.mxu0 %v1980_v4 }
  0x87   : > { %1815 = vmatpush3.bf16.msra.mxu1 %v1981_v2 }
  0x88   : > { %1809 = vmatmul.mubr.bf16.gmra.mxu1 %v303_v46  ;;  %1816 = vmatprep.subr.bf16.mxu1 %v1984_v5 }
  0x89   : > { %810 = vmatmul.mubr.bf16.gmra.mxu0 %v2395_v34  ;;  %v1430_v34 = vsel %vm1429_vm0, %v1421_v30, 0.0 }
  0x8a   : > { %819 = vmatprep.mubr.bf16.mxu0 %v2206_v3  ;;  %1431 = vadd.xlane.f32.xlu0 %v1430_v34 }
  0x8b   : > { %1817 = vmatpush3.bf16.msra.mxu1 %v1984_v5 }
  0x8c   : > { %1818 = vmatprep.subr.bf16.mxu1 %v1987_v8 }
  0x8f   : > { %1819 = vmatpush3.bf16.msra.mxu1 %v1987_v8 }
  0x90   : > { %1820 = vmatprep.subr.bf16.mxu1 %v1990_v11 }
  0x91   : > { %820 = vmatmul.mubr.bf16.gmra.mxu0 %v2400_v38  ;;  %v1433_v38 = vsel %vm1429_vm0, %v1422_v31, 0.0 }
  0x92   : > { %829 = vmatprep.mubr.bf16.mxu0 %v2206_v3  ;;  %v1982_v3 = vld [vmem:[%s2412_s16 + $0x68] sm:$0xff]   ;;  %1434 = vadd.xlane.f32.xlu0 %v1433_v38 }
  0x93   : > { %1716 = vmatprep.subr.bf16.mxu0 %v1982_v3  ;;  %1821 = vmatpush3.bf16.msra.mxu1 %v1990_v11 }
  0x94   : > { %1717 = vmatpush3.bf16.msra.mxu0 %v1983_v6  ;;  %1822 = vmatprep.subr.bf16.mxu1 %v1993_v14 }
  0x95   : > { %1718 = vmatprep.subr.bf16.mxu0 %v1985_v7 }
  0x96   : > { %1443 = vadd.xlane.f32.xlu0 %v1442_v44 }
  0x97   : > { %1823 = vmatpush3.bf16.msra.mxu1 %v1993_v14 }
  0x98   : > { %1719 = vmatpush3.bf16.msra.mxu0 %v1986_v9  ;;  %1824 = vmatprep.subr.bf16.mxu1 %v1996_v17 }
  0x99   : > { %830 = vmatmul.mubr.bf16.gmra.mxu0 %v303_v46  ;;  %1720 = vmatprep.subr.bf16.mxu0 %v1988_v10  ;;  %v1427_v46 = vsel %vm2477_vm1, %v1415_v42, 0.0 }
  0x9a   : > { %v1448_v48 = vsel %vm1429_vm0, %v1427_v46, 0.0 }
  0x9b   : > { %1825 = vmatpush3.bf16.msra.mxu1 %v1996_v17  ;;  %1449 = vadd.xlane.f32.xlu0 %v1448_v48 }
  0x9c   : > { %1721 = vmatpush3.bf16.msra.mxu0 %v1989_v12  ;;  %1826 = vmatprep.subr.bf16.mxu1 %v1999_v20 }
  0x9d   : > { %1722 = vmatprep.subr.bf16.mxu0 %v1991_v13 }
  0x9f   : > { %1827 = vmatpush3.bf16.msra.mxu1 %v1999_v20 }
  0xa0   : > { %1723 = vmatpush3.bf16.msra.mxu0 %v1992_v15 }
  0xa1   : > { %1724 = vmatprep.subr.bf16.mxu0 %v1994_v16 }
  0xa4   : > { %1725 = vmatpush3.bf16.msra.mxu0 %v1995_v18 }
  0xa5   : > { %1726 = vmatprep.subr.bf16.mxu0 %v1997_v19 }
  0xa8   : > { %1727 = vmatpush3.bf16.msra.mxu0 %v1998_v21 }
 0x120   : > { %v2511_v51 = vpop.f32.mrf.mxu1 }
 0x121   : > { %v2509_v50 = vpop.f32.mrf.mxu0  ;;  %v913_v53 = vsub.f32 0.0, %v2511_v51 }
 0x122   : > { %v905_v52 = vsub.f32 0.0, %v2509_v50  ;;  %v2517_v55 = vpop.f32.mrf.mxu1 }
 0x123   : > { %v2515_v54 = vpop.f32.mrf.mxu0  ;;  %v945_v57 = vmul.f32 1.442695, %v913_v53  ;;  %v907_v59 = vsub.f32 0.0, %v2517_v55 }
 0x124   : > { %v929_v56 = vmul.f32 1.442695, %v905_v52  ;;  %v906_v58 = vsub.f32 0.0, %v2515_v54  ;;  %v2523_v61 = vpop.f32.mrf.mxu1 }
 0x125   : > { %v2521_v60 = vpop.f32.mrf.mxu0  ;;  %v933_v63 = vmul.f32 1.442695, %v907_v59  ;;  %v916_v1 = vsub.f32 0.0, %v2523_v61 }
 0x126   : > { %2000 = vpow2.f32 %v929_v56  ;;  %v931_v62 = vmul.f32 1.442695, %v906_v58  ;;  %v908_v0 = vsub.f32 0.0, %v2521_v60  ;;  %v2529_v4 = vpop.f32.mrf.mxu1 }
 0x127   : > { %2002 = vpow2.f32 %v945_v57  ;;  %v2527_v2 = vpop.f32.mrf.mxu0  ;;  %v910_v6 = vsub.f32 0.0, %v2529_v4  ;;  %v951_v7 = vmul.f32 1.442695, %v916_v1 }
 0x128   : > { %2004 = vpow2.f32 %v931_v62  ;;  %v935_v3 = vmul.f32 1.442695, %v908_v0  ;;  %v909_v5 = vsub.f32 0.0, %v2527_v2  ;;  %v2535_v9 = vpop.f32.mrf.mxu1 }
 0x129   : > { %2006 = vpow2.f32 %v933_v63  ;;  %v2533_v8 = vpop.f32.mrf.mxu0  ;;  %v939_v11 = vmul.f32 1.442695, %v910_v6  ;;  %v925_v13 = vsub.f32 0.0, %v2535_v9 }
 0x12a   : > { %2008 = vpow2.f32 %v935_v3  ;;  %v937_v10 = vmul.f32 1.442695, %v909_v5  ;;  %v911_v12 = vsub.f32 0.0, %v2533_v8  ;;  %v2541_v15 = vpop.f32.mrf.mxu1 }
 0x12b   : > { %2010 = vpow2.f32 %v951_v7  ;;  %v2539_v14 = vpop.f32.mrf.mxu0  ;;  %v919_v18 = vsub.f32 0.0, %v2541_v15  ;;  %v969_v19 = vmul.f32 1.442695, %v925_v13 }
 0x12c   : > { %2012 = vpow2.f32 %v937_v10  ;;  %v941_v16 = vmul.f32 1.442695, %v911_v12  ;;  %v912_v17 = vsub.f32 0.0, %v2539_v14  ;;  %v2547_v21 = vpop.f32.mrf.mxu1 }
 0x12d   : > { %2014 = vpow2.f32 %v939_v11  ;;  %v2545_v20 = vpop.f32.mrf.mxu0  ;;  %v957_v23 = vmul.f32 1.442695, %v919_v18  ;;  %v928_v25 = vsub.f32 0.0, %v2547_v21 }
 0x12e   : > { %2016 = vpow2.f32 %v941_v16  ;;  %v943_v22 = vmul.f32 1.442695, %v912_v17  ;;  %v914_v24 = vsub.f32 0.0, %v2545_v20  ;;  %v2553_v27 = vpop.f32.mrf.mxu1 }
 0x12f   : > { %2018 = vpow2.f32 %v969_v19  ;;  %v2551_v26 = vpop.f32.mrf.mxu0  ;;  %v922_v30 = vsub.f32 0.0, %v2553_v27  ;;  %v975_v31 = vmul.f32 1.442695, %v928_v25 }
 0x130   : > { %2020 = vpow2.f32 %v943_v22  ;;  %v947_v28 = vmul.f32 1.442695, %v914_v24  ;;  %v915_v29 = vsub.f32 0.0, %v2551_v26 }
 0x131   : > { %2022 = vpow2.f32 %v957_v23  ;;  %v2557_v32 = vpop.f32.mrf.mxu0  ;;  %v963_v34 = vmul.f32 1.442695, %v922_v30 }
 0x132   : > { %2024 = vpow2.f32 %v947_v28  ;;  %v949_v33 = vmul.f32 1.442695, %v915_v29  ;;  %v917_v5 = vsub.f32 0.0, %v2557_v32 }
 0x133   : > { %v2001_v35 = vpop.eup %2000  ;;  %2026 = vpow2.f32 %v975_v31  ;;  %v2559_v36 = vpop.f32.mrf.mxu0 }
 0x134   : > { %v2003_v37 = vpop.eup %2002  ;;  %v977_v38 = vadd.f32 1.0, %v2001_v35  ;;  %2028 = vpow2.f32 %v949_v33  ;;  %v918_v11 = vsub.f32 0.0, %v2559_v36  ;;  %v953_v24 = vmul.f32 1.442695, %v917_v5 }
 0x135   : > { %v2005_v39 = vpop.eup %2004  ;;  %v985_v40 = vadd.f32 1.0, %v2003_v37  ;;  %2030 = vpow2.f32 %v963_v34  ;;  %v2561_v41 = vpop.f32.mrf.mxu0 }
 0x136   : > { %v2007_v42 = vpop.eup %2006  ;;  %2032 = vrcp.f32 %v977_v38  ;;  %v978_v43 = vadd.f32 1.0, %v2005_v39  ;;  %v920_v19 = vsub.f32 0.0, %v2561_v41  ;;  %v955_v33 = vmul.f32 1.442695, %v918_v11 }
 0x137   : > { %v2009_v44 = vpop.eup %2008  ;;  %2034 = vrcp.f32 %v985_v40  ;;  %v979_v45 = vadd.f32 1.0, %v2007_v42  ;;  %v2563_v46 = vpop.f32.mrf.mxu0 }
 0x138   : > { %v2011_v47 = vpop.eup %2010  ;;  %2036 = vrcp.f32 %v978_v43  ;;  %v980_v48 = vadd.f32 1.0, %v2009_v44  ;;  %v921_v25 = vsub.f32 0.0, %v2563_v46  ;;  %v959_v44 = vmul.f32 1.442695, %v920_v19 }
 0x139   : > { %v2013_v49 = vpop.eup %2012  ;;  %2038 = vrcp.f32 %v979_v45  ;;  %v988_v52 = vadd.f32 1.0, %v2011_v47  ;;  %v2565_v53 = vpop.f32.mrf.mxu0 }
 0x13a   : > { %v2015_v56 = vpop.eup %2014  ;;  %2040 = vrcp.f32 %v980_v48  ;;  %v981_v57 = vadd.f32 1.0, %v2013_v49  ;;  %v923_v34 = vsub.f32 0.0, %v2565_v53  ;;  %v961_v48 = vmul.f32 1.442695, %v921_v25 }
 0x13b   : > { %v2017_v58 = vpop.eup %2016  ;;  %2042 = vrcp.f32 %v988_v52  ;;  %v982_v59 = vadd.f32 1.0, %v2015_v56  ;;  %v2567_v62 = vpop.f32.mrf.mxu0 }
 0x13c   : > { %v2019_v63 = vpop.eup %2018  ;;  %2044 = vrcp.f32 %v981_v57  ;;  %v983_v0 = vadd.f32 1.0, %v2017_v58  ;;  %v924_v38 = vsub.f32 0.0, %v2567_v62  ;;  %v965_v57 = vmul.f32 1.442695, %v923_v34 }
 0x13d   : > { %v2021_v1 = vpop.eup %2020  ;;  %2046 = vrcp.f32 %v982_v59  ;;  %v997_v3 = vadd.f32 1.0, %v2019_v63  ;;  %v2570_v6 = vpop.f32.mrf.mxu0 }
 0x13e   : > { %v2023_v7 = vpop.eup %2022  ;;  %2048 = vrcp.f32 %v983_v0  ;;  %v984_v10 = vadd.f32 1.0, %v2021_v1  ;;  %v926_v39 = vsub.f32 0.0, %v2570_v6  ;;  %v967_v59 = vmul.f32 1.442695, %v924_v38 }
 0x13f   : > { %v2025_v12 = vpop.eup %2024  ;;  %2050 = vrcp.f32 %v997_v3  ;;  %v991_v13 = vadd.f32 1.0, %v2023_v7  ;;  %v2573_v16 = vpop.f32.mrf.mxu0 }
 0x140   : > { %v2027_v17 = vpop.eup %2026  ;;  %2052 = vrcp.f32 %v984_v10  ;;  %v986_v18 = vadd.f32 1.0, %v2025_v12  ;;  %v2577_v29 = vpop.f32.mrf.mxu1  ;;  %v927_v45 = vsub.f32 0.0, %v2573_v16  ;;  %v971_v63 = vmul.f32 1.442695, %v926_v39 }
 0x141   : > { %v2029_v22 = vpop.eup %2028  ;;  %2054 = vrcp.f32 %v991_v13  ;;  %v1000_v23 = vadd.f32 1.0, %v2027_v17  ;;  %v801_v28 = vpop.f32.mrf.mxu0 }
 0x142   : > { %v2031_v30 = vpop.eup %2030  ;;  %2056 = vrcp.f32 %v986_v18  ;;  %v987_v31 = vadd.f32 1.0, %v2029_v22  ;;  %v874_v42 = vpop.f32.mrf.mxu1  ;;  %v973_v10 = vmul.f32 1.442695, %v927_v45 }
 0x143   : > { %v2033_v35 = vpop.eup %2032  ;;  %2058 = vrcp.f32 %v1000_v23  ;;  %v994_v37 = vadd.f32 1.0, %v2031_v30  ;;  %v803_v40 = vpop.f32.mrf.mxu0 }
 0x144   : > { %v2035_v43 = vpop.eup %2034  ;;  %2060 = vrcp.f32 %v987_v31  ;;  %v1807_v52 = vpop.f32.mrf.mxu1  ;;  %v1025_v12 = vmul.f32 %v2033_v35, %v2509_v50 }
 0x145   : > { %v2037_v47 = vpop.eup %2036  ;;  %2062 = vrcp.f32 %v994_v37  ;;  %v805_v49 = vpop.f32.mrf.mxu0  ;;  %v1033_v23 = vmul.f32 %v2035_v43, %v2511_v51 }
 0x146   : > { %v2039_v56 = vpop.eup %2038  ;;  %2064 = vpow2.f32 %v953_v24  ;;  %v877_v1 = vpop.f32.mrf.mxu1  ;;  %v1026_v5 = vmul.f32 %v2037_v47, %v2515_v54  ;;  %v1049_v35 = vmul.f32 %v1025_v12, %v801_v28 }
 0x147   : > { %v2041_v58 = vpop.eup %2040  ;;  %2066 = vpow2.f32 %v955_v33  ;;  %v807_v0 = vpop.f32.mrf.mxu0  ;;  %v1027_v13 = vmul.f32 %v2039_v56, %v2517_v55  ;;  %v1057_v39 = vmul.f32 %v2577_v29, %v1033_v23 }
 0x148   : > { %v2043_v3 = vpop.eup %2042  ;;  %v1028_v7 = vmul.f32 %v2041_v58, %v2521_v60  ;;  %2068 = vpow2.f32 %v959_v44  ;;  %v2588_v19 = vpop.f32.mrf.mxu1 }
 0x149   : > { %v2045_v11 = vpop.eup %2044  ;;  %v1036_v17 = vmul.f32 %v2043_v3, %v2523_v61  ;;  %2070 = vpow2.f32 %v961_v48  ;;  %v811_v18 = vpop.f32.mrf.mxu0  ;;  %v1050_v61 = vmul.f32 %v1026_v5, %v803_v40  ;;  %v1051_v37 = vmul.f32 %v1027_v13, %v874_v42 }
 0x14a   : > { %v2047_v22 = vpop.eup %2046  ;;  %v1029_v54 = vmul.f32 %v2045_v11, %v2527_v2  ;;  %2072 = vpow2.f32 %v965_v57  ;;  %v1052_v25 = vmul.f32 %v1028_v7, %v805_v49  ;;  %v890_v30 = vpop.f32.mrf.mxu1 }
 0x14b   : > { %v2049_v60 = vpop.eup %2048  ;;  %v1030_v24 = vmul.f32 %v2047_v22, %v2529_v4  ;;  %2074 = vpow2.f32 %v967_v59  ;;  %v813_v50 = vpop.f32.mrf.mxu0  ;;  %v1060_v33 = vmul.f32 %v1807_v52, %v1036_v17 }
 0x14c   : > { %v2051_v55 = vpop.eup %2050  ;;  %2076 = vpow2.f32 %v971_v63  ;;  %v1053_v31 = vmul.f32 %v1029_v54, %v807_v0  ;;  %v1811_v4 = vpop.f32.mrf.mxu1  ;;  %v1073_v45 = vpack.c.bf16 %v1052_v25, %v1049_v35  ;;  %v1031_v42 = vmul.f32 %v2049_v60, %v2533_v8 }
 0x14d   : > { %v2053_v34 = vpop.eup %2052  ;;  %2078 = vpow2.f32 %v973_v10  ;;  %v1054_v51 = vmul.f32 %v1030_v24, %v877_v1  ;;  %v815_v38 = vpop.f32.mrf.mxu0  ;;  %v1078_v56 = vpack.c.bf16 %v1060_v33, %v1057_v39  ;;  %v1045_v63 = vmul.f32 %v2051_v55, %v2535_v9 }
 0x14e   : > { %v2055_v2 = vpop.eup %2054  ;;  %v1074_v43 = vpack.c.bf16 %v1053_v31, %v1050_v61  ;;  %v1032_v40 = vmul.f32 %v2053_v34, %v2539_v14  ;;  %v1055_v13 = vmul.f32 %v1031_v42, %v811_v18 }
 0x14f   : > { %v2057_v44 = vpop.eup %2056  ;;  %v1075_v47 = vpack.c.bf16 %v1054_v51, %v1051_v37  ;;  %v817_v48 = vpop.f32.mrf.mxu0  ;;  %v1039_v57 = vmul.f32 %v2055_v2, %v2541_v15  ;;  %v1069_v23 = vmul.f32 %v2588_v19, %v1045_v63 }
 0x150   : > { %v2059_v49 = vpop.eup %2058  ;;  %v1034_v52 = vmul.f32 %v2057_v44, %v2545_v20  ;;  %1311 = vmatprep.mubr.bf16.mxu0 %v1074_v43  ;;  %v893_v20 = vpop.f32.mrf.mxu1  ;;  %v1056_v15 = vmul.f32 %v1032_v40, %v813_v50 }
 0x151   : > { %v2061_v28 = vpop.eup %2060  ;;  %v1048_v29 = vmul.f32 %v2059_v49, %v2547_v21  ;;  %1828 = vmatprep.mubr.bf16.mxu1 %v1075_v47  ;;  %v2599_v58 = vpop.f32.mrf.mxu0  ;;  %1312 = vmatmul.mubr.bf16.vlgmr.msra.gmra.mxu0 %v1073_v45  ;;  %v1063_v17 = vmul.f32 %v1039_v57, %v890_v30 }
 0x152   : > { %v2063_v59 = vpop.eup %2062  ;;  %v1035_v14 = vmul.f32 %v2061_v28, %v2551_v26  ;;  %1829 = vmatmul.mubr.bf16.vlgmr.msra.gmra.mxu1 %v1078_v56  ;;  %v1058_v3 = vmul.f32 %v1034_v52, %v815_v38 }
 0x153   : > { %v2065_v0 = vpop.eup %2064  ;;  %v1042_v1 = vmul.f32 %v2063_v59, %v2553_v27  ;;  %v1072_v21 = vmul.f32 %v1811_v4, %v1048_v29  ;;  %v823_v10 = vpop.f32.mrf.mxu0 }
 0x154   : > { %v2067_v8 = vpop.eup %2066  ;;  %v989_v5 = vadd.f32 1.0, %v2065_v0  ;;  %v1059_v7 = vmul.f32 %v1035_v14, %v817_v48  ;;  %v1076_v24 = vpack.c.bf16 %v1058_v3, %v1055_v13 }
 0x155   : > { %v2069_v11 = vpop.eup %2068  ;;  %v990_v12 = vadd.f32 1.0, %v2067_v8  ;;  %v1066_v22 = vmul.f32 %v1042_v1, %v893_v20  ;;  %v1084_v55 = vpack.c.bf16 %v1072_v21, %v1069_v23  ;;  %v825_v61 = vpop.f32.mrf.mxu0 }
 0x156   : > { %v2071_v9 = vpop.eup %2070  ;;  %2080 = vrcp.f32 %v989_v5  ;;  %v992_v26 = vadd.f32 1.0, %v2069_v11  ;;  %v1077_v54 = vpack.c.bf16 %v1059_v7, %v1056_v15  ;;  %v1432_v5 = vpop.xlane.xlu0 %1431 }
 0x157   : > { %v2073_v60 = vpop.eup %2072  ;;  %2082 = vrcp.f32 %v990_v12  ;;  %v993_v27 = vadd.f32 1.0, %v2071_v9  ;;  %v1081_v25 = vpack.c.bf16 %v1066_v22, %v1063_v17  ;;  %v827_v35 = vpop.f32.mrf.mxu0 }
 0x158   : > { %v2075_v50 = vpop.eup %2074  ;;  %2084 = vrcp.f32 %v992_v26  ;;  %1319 = vmatprep.mubr.bf16.mxu0 %v1077_v54  ;;  %v995_v33 = vadd.f32 1.0, %v2073_v60  ;;  %v1455_v60 = vld [vmem:[%s2331_s15 + $0x8] sm:$0xff] }
 0x159   : > { %v2077_v31 = vpop.eup %2076  ;;  %2086 = vrcp.f32 %v993_v27  ;;  %v996_v18 = vadd.f32 1.0, %v2075_v50  ;;  %1832 = vmatprep.mubr.bf16.mxu1 %v1081_v25  ;;  %1320 = vmatmul.mubr.bf16.gmra.mxu0 %v1076_v24  ;;  %v831_v37 = vpop.f32.mrf.mxu0 }
 0x15a   : > { %v2079_v30 = vpop.eup %2078  ;;  %v998_v34 = vadd.f32 1.0, %v2077_v31  ;;  %1833 = vmatmul.mubr.bf16.gmra.mxu1 %v1084_v55  ;;  %v1435_v22 = vpop.xlane.xlu0 %1434 }
 0x15b   : > { %2088 = vrcp.f32 %v996_v18  ;;  %v999_v19 = vadd.f32 1.0, %v2079_v30  ;;  %v833_v2 = vpop.f32.mrf.mxu0  ;;  %v1438_v24 = vpop.xlane.xlu1 %1437  ;;  %v1456_v18 = vld [vmem:[%s2331_s15 + $0x10] sm:$0xff] }
 0x15c   : > { %2090 = vrcp.f32 %v998_v34 }
 0x15d   : > { %2092 = vrcp.f32 %v999_v19  ;;  %v835_v40 = vpop.f32.mrf.mxu0 }
 0x15e   : > { %2094 = vrcp.f32 %v995_v33 }
 0x15f   : > { %v837_v14 = vpop.f32.mrf.mxu0  ;;  %v1441_v19 = vpop.xlane.xlu1 %1440 }
 0x163   : > { %v2081_v51 = vpop.eup %2080 }
 0x164   : > { %v2083_v38 = vpop.eup %2082  ;;  %v1037_v44 = vmul.f32 %v2081_v51, %v2557_v32  ;;  %v1457_v51 = vld [vmem:[%s2331_s15 + $0x18] sm:$0xff] }
 0x165   : > { %v2085_v39 = vpop.eup %2084  ;;  %v1038_v43 = vmul.f32 %v2083_v38, %v2559_v36 }
 0x166   : > { %v2087_v4 = vpop.eup %2086  ;;  %v1040_v45 = vmul.f32 %v2085_v39, %v2561_v41  ;;  %v1061_v29 = vmul.f32 %v1037_v44, %v2599_v58 }
 0x167   : > { %v1041_v47 = vmul.f32 %v2087_v4, %v2563_v46  ;;  %v1062_v28 = vmul.f32 %v1038_v43, %v823_v10 }
 0x168   : > { %v2089_v48 = vpop.eup %2088  ;;  %v1064_v49 = vmul.f32 %v1040_v45, %v825_v61 }
 0x169   : > { %v2091_v52 = vpop.eup %2090  ;;  %v1044_v56 = vmul.f32 %v2089_v48, %v2567_v62  ;;  %v1065_v42 = vmul.f32 %v1041_v47, %v827_v35  ;;  %v1444_v47 = vpop.xlane.xlu0 %1443 }
 0x16a   : > { %v2093_v57 = vpop.eup %2092  ;;  %v1046_v32 = vmul.f32 %v2091_v52, %v2570_v6  ;;  %v1079_v41 = vpack.c.bf16 %v1064_v49, %v1061_v29  ;;  %v1458_v52 = vld [vmem:[%s2331_s15 + $0x20] sm:$0xff] }
 0x16b   : > { %v2095_v59 = vpop.eup %2094  ;;  %v1047_v36 = vmul.f32 %v2093_v57, %v2573_v16  ;;  %v1080_v63 = vpack.c.bf16 %v1065_v42, %v1062_v28  ;;  %v1068_v46 = vmul.f32 %v1044_v56, %v833_v2  ;;  %v1447_v57 = vpop.xlane.xlu1 %1446 }
 0x16c   : > { %v1043_v0 = vmul.f32 %v2095_v59, %v2565_v53  ;;  %v1070_v1 = vmul.f32 %v1046_v32, %v835_v40  ;;  %v1454_v53 = vld [vmem:[%s2331_s15] sm:$0xff]  ;;  %v1459_v32 = vld [vmem:[%s2331_s15 + $0x28] sm:$0xff] }
 0x16d   : > { %v1071_v20 = vmul.f32 %v1047_v36, %v837_v14  ;;  %1327 = vmatprep.mubr.bf16.mxu0 %v1080_v63 }
 0x16e   : > { %1328 = vmatmul.mubr.bf16.gmra.mxu0 %v1079_v41  ;;  %v1067_v3 = vmul.f32 %v1043_v0, %v831_v37  ;;  %v1450_v0 = vpop.xlane.xlu0 %1449 }
 0x16f   : > { %v1083_v62 = vpack.c.bf16 %v1071_v20, %v1068_v46 }
 0x170   : > { %v1082_v58 = vpack.c.bf16 %v1070_v1, %v1067_v3  ;;  %v1460_v3 = vld [vmem:[%s2331_s15 + $0x30] sm:$0xff] }
 0x171   : > { %1335 = vmatprep.mubr.bf16.mxu0 %v1083_v62 }
 0x176   : > { %1336 = vmatmul.mubr.bf16.gmra.mxu0 %v1082_v58 }
 0x211   : > { %v1728_v8 = vpop.f32.mrf.mxu0 }
 0x212   : > { %v1830_v16 = vpop.f32.mrf.mxu1 }
 0x213   : > { %v1729_v6 = vpop.f32.mrf.mxu0 }
 0x214   : > { %v1730_v15 = vadd.f32 %v1729_v6, %v1728_v8  ;;  %v1378_v7 = vpop.f32.mrf.mxu1 }
 0x215   : > { %v1731_v21 = vpop.f32.mrf.mxu0 }
 0x216   : > { %v1379_v10 = vadd.f32 %v1730_v15, %v1378_v7  ;;  %v1831_v11 = vpop.f32.mrf.mxu1  ;;  %v1461_v7 = vld [vmem:[%s2331_s15 + $0x38] sm:$0xff] }
 0x217   : > { %v1732_v12 = vpop.f32.mrf.mxu0 }
 0x218   : > { %v1462_v13 = vmul.f32 %v1432_v5, %v1379_v10  ;;  %v1733_v17 = vadd.f32 %v1732_v12, %v1731_v21  ;;  %v1381_v9 = vpop.f32.mrf.mxu1  ;;  %v1453_v5 = vpop.xlane.xlu1 %1452 }
 0x219   : > { %v1734_v26 = vpop.f32.mrf.mxu0 }
 0x21a   : > { %v1470_v23 = vadd.f32 %v1462_v13, %v1454_v53  ;;  %v1382_v54 = vadd.f32 %v1733_v17, %v1381_v9  ;;  %v1834_v39 = vpop.f32.mrf.mxu1 }
 0x21b   : > { %v1735_v27 = vpop.f32.mrf.mxu0 }
 0x21c   : > { %1478 = vst [vmem:[%s2331_s15] sm:$0xff] %v1470_v23  ;;  %v1463_v25 = vmul.f32 %v1435_v22, %v1382_v54  ;;  %v1736_v50 = vadd.f32 %v1735_v27, %v1734_v26  ;;  %v1394_v43 = vpop.f32.mrf.mxu1 }
 0x21d   : > { %v1737_v55 = vpop.f32.mrf.mxu0 }
 0x21e   : > { %v1471_v61 = vadd.f32 %v1463_v25, %v1455_v60  ;;  %v1387_v31 = vadd.f32 %v1830_v16, %v1736_v50  ;;  %v1835_v48 = vpop.f32.mrf.mxu1 }
 0x21f   : > { %v1738_v30 = vpop.f32.mrf.mxu0 }
 0x220   : > { %1479 = vst [vmem:[%s2331_s15 + $0x8] sm:$0xff] %v1471_v61  ;;  %v1464_v33 = vmul.f32 %v1438_v24, %v1387_v31  ;;  %v1739_v34 = vadd.f32 %v1738_v30, %v1737_v55  ;;  %v1397_v29 = vpop.f32.mrf.mxu1 }
 0x222   : > { %v1472_v35 = vadd.f32 %v1464_v33, %v1456_v18  ;;  %v1390_v37 = vadd.f32 %v1831_v11, %v1739_v34 }
 0x224   : > { %1480 = vst [vmem:[%s2331_s15 + $0x10] sm:$0xff] %v1472_v35  ;;  %v1465_v38 = vmul.f32 %v1441_v19, %v1390_v37 }
 0x226   : > { %v1473_v2 = vadd.f32 %v1465_v38, %v1457_v51 }
 0x228   : > { %1481 = vst [vmem:[%s2331_s15 + $0x18] sm:$0xff] %v1473_v2 }
 0x22e   : > { %v1740_v4 = vpop.f32.mrf.mxu0 }
 0x230   : > { %v1741_v44 = vpop.f32.mrf.mxu0 }
 0x231   : > { %v1742_v45 = vadd.f32 %v1741_v44, %v1740_v4 }
 0x232   : > { %v1743_v49 = vpop.f32.mrf.mxu0 }
 0x233   : > { %v1395_v40 = vadd.f32 %v1742_v45, %v1394_v43 }
 0x234   : > { %v1744_v56 = vpop.f32.mrf.mxu0 }
 0x235   : > { %v1466_v28 = vmul.f32 %v1444_v47, %v1395_v40  ;;  %v1745_v42 = vadd.f32 %v1744_v56, %v1743_v49 }
 0x236   : > { %v1746_v59 = vpop.f32.mrf.mxu0 }
 0x237   : > { %v1474_v36 = vadd.f32 %v1466_v28, %v1458_v52  ;;  %v1398_v63 = vadd.f32 %v1745_v42, %v1397_v29 }
 0x238   : > { %v1747_v41 = vpop.f32.mrf.mxu0 }
 0x239   : > { %1482 = vst [vmem:[%s2331_s15 + $0x20] sm:$0xff] %v1474_v36  ;;  %v1467_v14 = vmul.f32 %v1447_v57, %v1398_v63  ;;  %v1748_v46 = vadd.f32 %v1747_v41, %v1746_v59 }
 0x23a   : > { %v1749_v20 = vpop.f32.mrf.mxu0 }
 0x23b   : > { %v1475_v62 = vadd.f32 %v1467_v14, %v1459_v32  ;;  %v1403_v1 = vadd.f32 %v1834_v39, %v1748_v46 }
 0x23c   : > { %v1750_v58 = vpop.f32.mrf.mxu0 }
 0x23d   : > { %1483 = vst [vmem:[%s2331_s15 + $0x28] sm:$0xff] %v1475_v62  ;;  %v1468_v8 = vmul.f32 %v1450_v0, %v1403_v1  ;;  %v1751_v16 = vadd.f32 %v1750_v58, %v1749_v20 }
 0x23f   : > { %v1476_v6 = vadd.f32 %v1468_v8, %v1460_v3  ;;  %v1406_v15 = vadd.f32 %v1835_v48, %v1751_v16 }
 0x241   : > { %1484 = vst [vmem:[%s2331_s15 + $0x30] sm:$0xff] %v1476_v6  ;;  %v1469_v21 = vmul.f32 %v1453_v5, %v1406_v15 }
 0x243   : > { %v1477_v10 = vadd.f32 %v1469_v21, %v1461_v7 }
 0x245   : > { %1485 = vst [vmem:[%s2331_s15 + $0x38] sm:$0xff] %v1477_v10 }
 0x246 PF: > { %s1687_s28 = sshll.u32 %s2190_s29, 10  ;;  %s1500_s19 = sshll.u32 %s2331_s15, 4  ;;  %s2637_s19 = int_to_ptr.vmem [resolvable:$true] %s1500_s19 }
 0x247   : > { %s2634_s25 = scalar_lea.hbm %s2698_s6, %s1687_s28  ;;  %s2641_s20 = scalar_lea.sflag [#allocation5], %s251_s18 }
 0x248   : > { %s2108_s21 = scalar_lea.vmem %s2637_s19, 1024  ;;  %s2207_s29 = smov [#allocation4]  }
 0x249   : > { %p2109_p6 = scmp.ne.s32.totalorder %s2637_s19, %s2108_s21  ;;  %s2112_s22 = sshll.u32 %s2207_s29, 4  ;;  %s2113_s22 = int_to_ptr.vmem [resolvable:$false] %s2112_s22 }
 0x24a   : > { %s2114_s23 = scalar_lea.vmem %s2113_s22, 2048  ;;  %p2115_p10 = scmp.lt.s32.totalorder %s2637_s19, %s2113_s22 }
 0x24b   : > { %p2110_p7 = pnand %p2109_p6, %p2297_p8  ;;  %p2116_p11 = scmp.lt.s32.totalorder %s2114_s23, %s2108_s21 }
 0x24d   : > { %p2111_p9 = pneg %p2110_p7  ;;  %p2117_p12 = por %p2116_p11, %p2115_p10 }
 0x24f   : > { %p2118_p13 = pnand %p2117_p12, %p2111_p9 }
 0x251   : > { %2121 = shalt.err (!%p2118_p13)
}
 0x252   : > { %s2122_s18 = scalar_lea.hbm %s2634_s25, 1024  ;;  %s2126_s16 = scalar_lea.hbm %s2698_s6, 2048 }
 0x253   : > { %p2123_p1 = scmp.ne.s32.totalorder %s2634_s25, %s2122_s18  ;;  %p2127_p4 = scmp.lt.s32.totalorder %s2634_s25, %s2698_s6 }
 0x254   : > { %p2128_p5 = scmp.lt.s32.totalorder %s2126_s16, %s2122_s18 }
 0x255   : > { %p2124_p2 = pnand %p2123_p1, %p2297_p8 }
 0x256   : > { %p2129_p6 = por %p2128_p5, %p2127_p4 }
 0x257   : > { %p2125_p3 = pneg %p2124_p2 }
 0x259   : > { %p2130_p7 = pnand %p2129_p6, %p2125_p3 }
 0x25b   : > { %2133 = shalt.err (!%p2130_p7)
}
 0x25c   : > { %s2208_s10 = smov 128   ;;  %s2209_s21 = smov 8  }
 0x25d   : > { %1836 = dma.vmem_to_hbm [thread:$0]  (%p2297_p8), %s2637_s19, 1024, %s2634_s25, %s2641_s20, %s2208_s10, %s2208_s10, %s2209_s21  }
 0x25e PF: > { %p1842_p9 = scmp.ge.s32.totalorder %s2202_s8, 2  ;;  %s1515_s29 = sand.u32 1, %s2174_s26  }
 0x25f   : > { %s1516_s22 = scalar_lea.sflag [#allocation5], %s1515_s29 }
 0x260   : > { %p1839_p10 = pnand %p1842_p9, %p2307_p0 }
 0x262   : > { %p1840_p11 = pneg %p1839_p10 }
 0x264   : > { %2169 = dma.done.wait (%p1840_p11), %s1516_s22, 1024  }
 0x265   : > { %2171 = vsyncadd (%p1840_p11), %s1516_s22, 4294966272  ;;  %s25_s8 = sadd.s32 1, %s2202_s8   ;;  %s2703_s26 = smov %s2178_s27 }
 0x266   : > { %p22_p12 = scmp.ge.s32.totalorder %s25_s8, 10   ;;  %s2704_s27 = smov %s2182_s0 }
 0x267   : > { %s2705_s0 = smov %s2315_s17  ;;  %s2706_s28 = smov %s2194_s30 }
 0x268   : > { %s2707_s29 = smov %s2198_s7  ;;  %s2708_s30 = smov %s2711_s11 }
 0x269   : > { %s2709_s7 = smov %s2715_s12  ;;  %24 = sbr.rel (!%p22_p12) target bundleno = 20 (0x14), region = 89 }
 0x26e   :  { %1521 = vsyncpa [#allocation5], 1 }
 0x26f   :  { %1523 = vsyncpa [#allocation5 + $0x1], 1 }

</bundles_post_ra>
